<compile_context>
chip_gen: v7x
topology: tpu7x:2x2x1
jax: 0.10.0
libtpu: 0.0.40
codegen_flags: <defaults>
</compile_context>

<pallas_src>
import jax
import jax.numpy as jnp
from jax.experimental import pallas as pl

_EPS = 1e-5  # nn.LayerNorm default eps


def _round_up(x, m):
    return ((x + m - 1) // m) * m


# ----------------------------------------------------------------------------
# One-time parameter packing (hoisted out of the per-call jitted path).
# ----------------------------------------------------------------------------
def prepare_params(params, sm_dim, lg_dim):
    """Pack every layer into W_all (n_mats, P, P) and B_all (n_mats, 1, P)."""
    need_proj = sm_dim != lg_dim
    T = 2 * (sm_dim + lg_dim)
    P = _round_up(T, 128)
    hi = jax.lax.Precision.HIGHEST

    # Lane offsets.  State layout:        [sm_r | sm_i | lg_r | lg_i | pad]
    s_sm, s_lg = 0, 2 * sm_dim
    # Attn-space layout (after proj_in):  [smA_r | smA_i | lgA_r | lgA_i | pad]
    a_sm, a_lg = 0, 2 * lg_dim

    def cl_block(wr, wi):
        # Complex linear as one real matmul:  [xr|xi] @ [[wr, wi], [-wi, wr]]
        return jnp.concatenate(
            [jnp.concatenate([wr, wi], axis=1),
             jnp.concatenate([-wi, wr], axis=1)], axis=0)

    def attn_block(a):
        # Attention0 on a single cls token collapses exactly to
        #   out_r = -2*(x_i @ wv @ wo) - 2*bo ;  out_i = 2*(x_r @ wv @ wo) + 2*bo
        wa = jnp.dot(a["wv"], a["wo"], precision=hi)              # (d, d)
        z = jnp.zeros_like(wa)
        blk = jnp.concatenate(
            [jnp.concatenate([z, 2.0 * wa], axis=1),
             jnp.concatenate([-2.0 * wa, z], axis=1)], axis=0)    # (2d, 2d)
        bo = a["bo"].reshape(-1)
        bias = jnp.concatenate([-2.0 * bo, 2.0 * bo], axis=0)     # (2d,)
        return blk, bias

    Ws, Bs = [], []
    for layer in params["layers"]:
        sm_br, lg_br = layer["sm_attend_lg"], layer["lg_attend_sm"]

        if need_proj:
            w1 = jnp.zeros((P, P), jnp.float32)
            b1 = jnp.zeros((P,), jnp.float32)
            wr, wi, br, bi = sm_br["proj_in"]                      # sm -> lg
            w1 = w1.at[s_sm:s_sm + 2 * sm_dim,
                       a_sm:a_sm + 2 * lg_dim].set(cl_block(wr, wi))
            b1 = b1.at[a_sm:a_sm + 2 * lg_dim].set(jnp.concatenate([br, bi]))
            wr, wi, br, bi = lg_br["proj_in"]                      # lg -> sm
            w1 = w1.at[s_lg:s_lg + 2 * lg_dim,
                       a_lg:a_lg + 2 * sm_dim].set(cl_block(wr, wi))
            b1 = b1.at[a_lg:a_lg + 2 * sm_dim].set(jnp.concatenate([br, bi]))
            Ws.append(w1)
            Bs.append(b1)

        w2 = jnp.zeros((P, P), jnp.float32)
        b2 = jnp.zeros((P,), jnp.float32)

        blk, bias = attn_block(sm_br["attn"])                      # lg-dim space
        if need_proj:
            wr, wi, br, bi = sm_br["proj_out"]                     # lg -> sm
            po = cl_block(wr, wi)
            blk = jnp.dot(blk, po, precision=hi)
            bias = jnp.dot(bias, po, precision=hi) + jnp.concatenate([br, bi])
        w2 = w2.at[a_sm:a_sm + 2 * lg_dim, s_sm:s_sm + 2 * sm_dim].set(blk)
        b2 = b2.at[s_sm:s_sm + 2 * sm_dim].set(bias)

        blk, bias = attn_block(lg_br["attn"])                      # sm-dim space
        if need_proj:
            wr, wi, br, bi = lg_br["proj_out"]                     # sm -> lg
            po = cl_block(wr, wi)
            blk = jnp.dot(blk, po, precision=hi)
            bias = jnp.dot(bias, po, precision=hi) + jnp.concatenate([br, bi])
        w2 = w2.at[a_lg:a_lg + 2 * sm_dim, s_lg:s_lg + 2 * lg_dim].set(blk)
        b2 = b2.at[s_lg:s_lg + 2 * lg_dim].set(bias)
        Ws.append(w2)
        Bs.append(b2)

    W_all = jnp.stack(Ws).astype(jnp.float32)                      # (n_mats, P, P)
    B_all = jnp.stack(Bs)[:, None, :].astype(jnp.float32)          # (n_mats, 1, P)
    cfg = dict(sm_dim=sm_dim, lg_dim=lg_dim, depth=len(params["layers"]),
               need_proj=need_proj, P=P, T=T,
               ln_widths=((lg_dim, lg_dim, sm_dim, sm_dim) if need_proj
                          else (sm_dim, sm_dim, lg_dim, lg_dim)))
    return W_all, B_all, cfg


# ----------------------------------------------------------------------------
# Fused Pallas kernel: full CrossTransformer forward on the cls tokens.
# ----------------------------------------------------------------------------
def _make_kernel(depth, need_proj, P, ln_widths):
    offs, o = [], 0
    for w in ln_widths:
        offs.append(o)
        o += w
    inv_ws = tuple(1.0 / w for w in ln_widths)

    def kernel(state_ref, w_ref, b_ref, out_ref):
        # Lane masks for the 4 LayerNorm segments (hoisted, built once).
        lane = jax.lax.broadcasted_iota(jnp.int32, (1, P), 1)
        masks = [(lane >= off) & (lane < off + w)
                 for off, w in zip(offs, ln_widths)]

        def seg_layernorm(h):
            # Independent LayerNorm (eps=1e-5, no affine) per lane segment.
            # Pad lanes (outside every mask) stay exactly zero.
            mean = jnp.zeros_like(h)
            for msk, inv in zip(masks, inv_ws):
                s = jnp.sum(jnp.where(msk, h, 0.0), axis=-1, keepdims=True)
                mean = mean + jnp.where(msk, s * inv, 0.0)
            c = h - mean
            sq = c * c
            var = jnp.zeros_like(h)
            for msk, inv in zip(masks, inv_ws):
                s = jnp.sum(jnp.where(msk, sq, 0.0), axis=-1, keepdims=True)
                var = var + jnp.where(msk, s * inv, 0.0)
            return c * jax.lax.rsqrt(var + _EPS)

        x = state_ref[...]
        m = 0
        for _ in range(depth):               # unrolled: depth is static
            if need_proj:
                # block-diag ComplexLinear proj_in for both branches
                y = jnp.dot(x, w_ref[m],
                            preferred_element_type=jnp.float32) + b_ref[m]
                m += 1
                y = seg_layernorm(y)
            else:
                y = seg_layernorm(x)
            # block-diag (attention collapse @ proj_out) for both branches,
            # with the +/-2 scale and real<->imag swap baked into the weights.
            x = x + jnp.dot(y, w_ref[m],
                            preferred_element_type=jnp.float32) + b_ref[m]
            m += 1
        out_ref[...] = x

    return kernel


# ----------------------------------------------------------------------------
# Jitted forward wrapper (params already packed).
# ----------------------------------------------------------------------------
def make_cross_transformer(cfg):
    sm_dim, lg_dim = cfg["sm_dim"], cfg["lg_dim"]
    P, T = cfg["P"], cfg["T"]
    kernel = _make_kernel(cfg["depth"], cfg["need_proj"], P, cfg["ln_widths"])

    @jax.jit
    def fwd(sm_tokens, lg_tokens, W_all, B_all):
        b = sm_tokens.shape[0]
        sm_cls = sm_tokens[:, 0, :]
        lg_cls = lg_tokens[:, 0, :]
        state = jnp.concatenate(
            [jnp.real(sm_cls), jnp.imag(sm_cls),
             jnp.real(lg_cls), jnp.imag(lg_cls)], axis=-1).astype(jnp.float32)
        state = jnp.pad(state, ((0, 0), (0, P - T)))

        out = pl.pallas_call(
            kernel,
            out_shape=jax.ShapeDtypeStruct((b, P), jnp.float32),
        )(state, W_all, B_all)

        sm_new = jax.lax.complex(out[:, 0:sm_dim], out[:, sm_dim:2 * sm_dim])
        lg_new = jax.lax.complex(out[:, 2 * sm_dim:2 * sm_dim + lg_dim],
                                 out[:, 2 * sm_dim + lg_dim:T])
        sm_out = sm_tokens.at[:, 0, :].set(sm_new.astype(sm_tokens.dtype))
        lg_out = lg_tokens.at[:, 0, :].set(lg_new.astype(lg_tokens.dtype))
        return sm_out, lg_out

    return fwd


# ----------------------------------------------------------------------------
# Plain-JAX reference (general attention path, incl. wq/wk, softmax and all 8
# attention_block calls) used to validate the fused / specialized kernel.
# ----------------------------------------------------------------------------
def _reference_forward(sm_tokens, lg_tokens, params, heads, dim_head):
    scale = dim_head ** -0.5

    def ln(x):
        mu = jnp.mean(x, axis=-1, keepdims=True)
        var = jnp.mean(jnp.square(x - mu), axis=-1, keepdims=True)
        return (x - mu) * jax.lax.rsqrt(var + _EPS)

    def attention(xq, xk, xv, p):
        b, n, _ = xq.shape
        q = (xq @ p["wq"]).reshape(b, n, heads, dim_head).transpose(0, 2, 1, 3)
        k = (xk @ p["wk"]).reshape(b, n, heads, dim_head).transpose(0, 2, 1, 3)
        v = (xv @ p["wv"]).reshape(b, n, heads, dim_head).transpose(0, 2, 1, 3)
        dots = jnp.einsum("bhid,bhjd->bhij", q, k) * scale
        attn = jax.nn.softmax(dots, axis=-1)
        out = jnp.einsum("bhij,bhjd->bhid", attn, v)
        out = out.transpose(0, 2, 1, 3).reshape(b, n, heads * dim_head)
        return out @ p["wo"] + p["bo"]

    def attention0(xr, xi, p):
        f = lambda q, k, v: attention(q, k, v, p)
        aaa, aab = f(xr, xr, xr), f(xr, xr, xi)
        aba, baa = f(xr, xi, xr), f(xi, xr, xr)
        abb, bab = f(xr, xi, xi), f(xi, xr, xi)
        bba, bbb = f(xi, xi, xr), f(xi, xi, xi)
        return aaa - abb - bab - bba, -bbb + baa + aba + aab

    def clinear(xr, xi, w):
        wr, wi, br, bi = w
        return xr @ wr - xi @ wi + br, xr @ wi + xi @ wr + bi

    def branch(xr, xi, bp):
        if bp["proj_in"] is not None:
            xr, xi = clinear(xr, xi, bp["proj_in"])
        xr, xi = ln(xr), ln(xi)
        xr, xi = attention0(xr, xi, bp["attn"])
        if bp["proj_out"] is not None:
            xr, xi = clinear(xr, xi, bp["proj_out"])
        return xr, xi

    smr, smi = jnp.real(sm_tokens), jnp.imag(sm_tokens)
    lgr, lgi = jnp.real(lg_tokens), jnp.imag(lg_tokens)
    scr, sci = smr[:, :1], smi[:, :1]
    lcr, lci = lgr[:, :1], lgi[:, :1]
    for layer in params["layers"]:
        dr, di = branch(scr, sci, layer["sm_attend_lg"])
        scr, sci = scr + dr, sci + di
        dr, di = branch(lcr, lci, layer["lg_attend_sm"])
        lcr, lci = lcr + dr, lci + di
    sm = jax.lax.complex(jnp.concatenate([scr, smr[:, 1:]], axis=1),
                         jnp.concatenate([sci, smi[:, 1:]], axis=1))
    lg = jax.lax.complex(jnp.concatenate([lcr, lgr[:, 1:]], axis=1),
                         jnp.concatenate([lci, lgi[:, 1:]], axis=1))
    return sm, lg


# ----------------------------------------------------------------------------
# Deterministic synthetic parameters (shapes from __init__)
# ----------------------------------------------------------------------------
def init_params(key, sm_dim, lg_dim, depth, heads, dim_head):
    inner = heads * dim_head

    def nrm(k, shape):
        return 0.02 * jax.random.normal(k, shape, dtype=jnp.float32)

    def attn_params(ks, dim):
        # Params Attention0's attention_block actually uses: to_q/to_k/to_v
        # (no bias) and to_out[0] (with bias).
        return {"wq": nrm(ks[0], (dim, inner)),
                "wk": nrm(ks[1], (dim, inner)),
                "wv": nrm(ks[2], (dim, inner)),
                "wo": nrm(ks[3], (inner, dim)),
                "bo": nrm(ks[4], (1, dim))}

    def clinear(ks, din, dout):
        return (nrm(ks[0], (din, dout)), nrm(ks[1], (din, dout)),
                nrm(ks[2], (dout,)), nrm(ks[3], (dout,)))

    layers = []
    for lk in jax.random.split(key, depth):
        ks = jax.random.split(lk, 26)
        need_proj = sm_dim != lg_dim
        sm_attend_lg = {
            "proj_in": clinear(ks[0:4], sm_dim, lg_dim) if need_proj else None,
            "attn": attn_params(ks[4:9], lg_dim),
            "proj_out": clinear(ks[9:13], lg_dim, sm_dim) if need_proj else None,
        }
        lg_attend_sm = {
            "proj_in": clinear(ks[13:17], lg_dim, sm_dim) if need_proj else None,
            "attn": attn_params(ks[17:22], sm_dim),
            "proj_out": clinear(ks[22:26], sm_dim, lg_dim) if need_proj else None,
        }
        layers.append({"sm_attend_lg": sm_attend_lg,
                       "lg_attend_sm": lg_attend_sm})
    return {"layers": layers}


if __name__ == "__main__":
    def run_case(sm_dim, lg_dim, depth, heads, dim_head, b, n_sm, n_lg):
        key = jax.random.PRNGKey(0)
        k1, k2, k3, k4, kp = jax.random.split(key, 5)
        sm_tokens = jax.lax.complex(
            jax.random.normal(k1, (b, n_sm, sm_dim), jnp.float32),
            jax.random.normal(k2, (b, n_sm, sm_dim), jnp.float32))
        lg_tokens = jax.lax.complex(
            jax.random.normal(k3, (b, n_lg, lg_dim), jnp.float32),
            jax.random.normal(k4, (b, n_lg, lg_dim), jnp.float32))
        params = init_params(kp, sm_dim, lg_dim, depth, heads, dim_head)

        # One-time weight packing, hoisted out of the jitted forward path.
        W_all, B_all, cfg = prepare_params(params, sm_dim, lg_dim)
        fwd = make_cross_transformer(cfg)

        sm_out, lg_out = fwd(sm_tokens, lg_tokens, W_all, B_all)
        jax.block_until_ready((sm_out, lg_out))

        assert sm_out.shape == (b, n_sm, sm_dim) and sm_out.dtype == jnp.complex64
        assert lg_out.shape == (b, n_lg, lg_dim) and lg_out.dtype == jnp.complex64

        # Validate the fused / specialized kernel against the full general-path
        # reference (incl. wq/wk, softmax and all 8 attention_block calls).
        sm_ref, lg_ref = _reference_forward(sm_tokens, lg_tokens, params,
                                            heads, dim_head)
        assert jnp.allclose(sm_out, sm_ref, atol=1e-4, rtol=1e-4)
        assert jnp.allclose(lg_out, lg_ref, atol=1e-4, rtol=1e-4)

    # Case 1: sm_dim != lg_dim -> ProjectInOut active (2 fused matmuls / layer).
    run_case(sm_dim=32, lg_dim=64, depth=2, heads=2, dim_head=16,
             b=2, n_sm=9, n_lg=5)
    # Case 2: equal dims -> identity projections (1 fused matmul / layer).
    run_case(sm_dim=32, lg_dim=32, depth=1, heads=2, dim_head=16,
             b=2, n_sm=6, n_lg=4)

    print("KERNEL_OK")
</pallas_src>

<mosaic_0001>
module attributes {stable_mosaic.version = 11 : i64} {
  func.func @kernel(%arg0: memref<2x256xf32, #tpu.memory_space<vmem>>, %arg1: memref<4x256x256xf32, #tpu.memory_space<vmem>>, %arg2: memref<4x1x256xf32, #tpu.memory_space<vmem>>, %arg3: memref<2x256xf32, #tpu.memory_space<vmem>>) attributes {dimension_semantics = [], scalar_prefetch = 0 : i64, scratch_operands = 0 : i64, tpu.core_type = #tpu.core_type<tc>} {
    %0 = tpu.iota {dimensions = array<i32: 1>} : vector<1x256xi32>
    %c0_i32 = arith.constant 0 : i32
    %1 = vector.broadcast %c0_i32 : i32 to vector<1x256xi32>
    %2 = arith.cmpi sge, %0, %1 : vector<1x256xi32>
    %c64_i32 = arith.constant 64 : i32
    %3 = vector.broadcast %c64_i32 : i32 to vector<1x256xi32>
    %4 = arith.cmpi slt, %0, %3 : vector<1x256xi32>
    %5 = arith.andi %2, %4 : vector<1x256xi1>
    %c64_i32_0 = arith.constant 64 : i32
    %6 = vector.broadcast %c64_i32_0 : i32 to vector<1x256xi32>
    %7 = arith.cmpi sge, %0, %6 : vector<1x256xi32>
    %c128_i32 = arith.constant 128 : i32
    %8 = vector.broadcast %c128_i32 : i32 to vector<1x256xi32>
    %9 = arith.cmpi slt, %0, %8 : vector<1x256xi32>
    %10 = arith.andi %7, %9 : vector<1x256xi1>
    %c128_i32_1 = arith.constant 128 : i32
    %11 = vector.broadcast %c128_i32_1 : i32 to vector<1x256xi32>
    %12 = arith.cmpi sge, %0, %11 : vector<1x256xi32>
    %c160_i32 = arith.constant 160 : i32
    %13 = vector.broadcast %c160_i32 : i32 to vector<1x256xi32>
    %14 = arith.cmpi slt, %0, %13 : vector<1x256xi32>
    %15 = arith.andi %12, %14 : vector<1x256xi1>
    %c160_i32_2 = arith.constant 160 : i32
    %16 = vector.broadcast %c160_i32_2 : i32 to vector<1x256xi32>
    %17 = arith.cmpi sge, %0, %16 : vector<1x256xi32>
    %c192_i32 = arith.constant 192 : i32
    %18 = vector.broadcast %c192_i32 : i32 to vector<1x256xi32>
    %19 = arith.cmpi slt, %0, %18 : vector<1x256xi32>
    %20 = arith.andi %17, %19 : vector<1x256xi1>
    %c0 = arith.constant 0 : index
    %c0_3 = arith.constant 0 : index
    %21 = vector.load %arg0[%c0, %c0_3] : memref<2x256xf32, #tpu.memory_space<vmem>>, vector<2x256xf32>
    %c0_4 = arith.constant 0 : index
    %c0_5 = arith.constant 0 : index
    %c0_6 = arith.constant 0 : index
    %22 = vector.load %arg1[%c0_4, %c0_5, %c0_6] : memref<4x256x256xf32, #tpu.memory_space<vmem>>, vector<1x256x256xf32>
    %23 = vector.shape_cast %22 : vector<1x256x256xf32> to vector<256x256xf32>
    %cst = arith.constant dense<0.000000e+00> : vector<2x256xf32>
    %24 = tpu.matmul %21, %23, %cst {dimension_numbers = #tpu.dot_dimension_numbers<[1], [0], [0], [1], [0, 0, 1, 1], [], []>} : vector<2x256xf32>, vector<256x256xf32>, vector<2x256xf32> -> vector<2x256xf32>
    %c0_7 = arith.constant 0 : index
    %c0_8 = arith.constant 0 : index
    %c0_9 = arith.constant 0 : index
    %25 = vector.load %arg2[%c0_7, %c0_8, %c0_9] : memref<4x1x256xf32, #tpu.memory_space<vmem>>, vector<1x1x256xf32>
    %26 = vector.shape_cast %25 : vector<1x1x256xf32> to vector<1x256xf32>
    %27 = vector.broadcast %26 : vector<1x256xf32> to vector<2x256xf32>
    %28 = arith.addf %24, %27 : vector<2x256xf32>
    %cst_10 = arith.constant 0.000000e+00 : f32
    %29 = vector.broadcast %cst_10 : f32 to vector<2x256xf32>
    %cst_11 = arith.constant 0.000000e+00 : f32
    %30 = vector.shape_cast %5 : vector<1x256xi1> to vector<1x256xi1>
    %31 = vector.broadcast %30 : vector<1x256xi1> to vector<2x256xi1>
    %32 = vector.broadcast %cst_11 : f32 to vector<2x256xf32>
    %33 = arith.select %31, %28, %32 : vector<2x256xi1>, vector<2x256xf32>
    %cst_12 = arith.constant dense<0.000000e+00> : vector<2xf32>
    %34 = vector.multi_reduction <add>, %33, %cst_12 [1] : vector<2x256xf32> to vector<2xf32>
    %35 = vector.shape_cast %34 : vector<2xf32> to vector<2x1xf32>
    %cst_13 = arith.constant 1.562500e-02 : f32
    %36 = vector.broadcast %cst_13 : f32 to vector<2x1xf32>
    %37 = arith.mulf %35, %36 : vector<2x1xf32>
    %cst_14 = arith.constant 0.000000e+00 : f32
    %38 = vector.shape_cast %5 : vector<1x256xi1> to vector<1x256xi1>
    %39 = vector.broadcast %38 : vector<1x256xi1> to vector<2x256xi1>
    %40 = vector.shape_cast %37 : vector<2x1xf32> to vector<2x1xf32>
    %41 = vector.broadcast %40 : vector<2x1xf32> to vector<2x256xf32>
    %42 = vector.broadcast %cst_14 : f32 to vector<2x256xf32>
    %43 = arith.select %39, %41, %42 : vector<2x256xi1>, vector<2x256xf32>
    %44 = arith.addf %29, %43 : vector<2x256xf32>
    %cst_15 = arith.constant 0.000000e+00 : f32
    %45 = vector.shape_cast %10 : vector<1x256xi1> to vector<1x256xi1>
    %46 = vector.broadcast %45 : vector<1x256xi1> to vector<2x256xi1>
    %47 = vector.broadcast %cst_15 : f32 to vector<2x256xf32>
    %48 = arith.select %46, %28, %47 : vector<2x256xi1>, vector<2x256xf32>
    %cst_16 = arith.constant dense<0.000000e+00> : vector<2xf32>
    %49 = vector.multi_reduction <add>, %48, %cst_16 [1] : vector<2x256xf32> to vector<2xf32>
    %50 = vector.shape_cast %49 : vector<2xf32> to vector<2x1xf32>
    %cst_17 = arith.constant 1.562500e-02 : f32
    %51 = vector.broadcast %cst_17 : f32 to vector<2x1xf32>
    %52 = arith.mulf %50, %51 : vector<2x1xf32>
    %cst_18 = arith.constant 0.000000e+00 : f32
    %53 = vector.shape_cast %10 : vector<1x256xi1> to vector<1x256xi1>
    %54 = vector.broadcast %53 : vector<1x256xi1> to vector<2x256xi1>
    %55 = vector.shape_cast %52 : vector<2x1xf32> to vector<2x1xf32>
    %56 = vector.broadcast %55 : vector<2x1xf32> to vector<2x256xf32>
    %57 = vector.broadcast %cst_18 : f32 to vector<2x256xf32>
    %58 = arith.select %54, %56, %57 : vector<2x256xi1>, vector<2x256xf32>
    %59 = arith.addf %44, %58 : vector<2x256xf32>
    %cst_19 = arith.constant 0.000000e+00 : f32
    %60 = vector.shape_cast %15 : vector<1x256xi1> to vector<1x256xi1>
    %61 = vector.broadcast %60 : vector<1x256xi1> to vector<2x256xi1>
    %62 = vector.broadcast %cst_19 : f32 to vector<2x256xf32>
    %63 = arith.select %61, %28, %62 : vector<2x256xi1>, vector<2x256xf32>
    %cst_20 = arith.constant dense<0.000000e+00> : vector<2xf32>
    %64 = vector.multi_reduction <add>, %63, %cst_20 [1] : vector<2x256xf32> to vector<2xf32>
    %65 = vector.shape_cast %64 : vector<2xf32> to vector<2x1xf32>
    %cst_21 = arith.constant 3.125000e-02 : f32
    %66 = vector.broadcast %cst_21 : f32 to vector<2x1xf32>
    %67 = arith.mulf %65, %66 : vector<2x1xf32>
    %cst_22 = arith.constant 0.000000e+00 : f32
    %68 = vector.shape_cast %15 : vector<1x256xi1> to vector<1x256xi1>
    %69 = vector.broadcast %68 : vector<1x256xi1> to vector<2x256xi1>
    %70 = vector.shape_cast %67 : vector<2x1xf32> to vector<2x1xf32>
    %71 = vector.broadcast %70 : vector<2x1xf32> to vector<2x256xf32>
    %72 = vector.broadcast %cst_22 : f32 to vector<2x256xf32>
    %73 = arith.select %69, %71, %72 : vector<2x256xi1>, vector<2x256xf32>
    %74 = arith.addf %59, %73 : vector<2x256xf32>
    %cst_23 = arith.constant 0.000000e+00 : f32
    %75 = vector.shape_cast %20 : vector<1x256xi1> to vector<1x256xi1>
    %76 = vector.broadcast %75 : vector<1x256xi1> to vector<2x256xi1>
    %77 = vector.broadcast %cst_23 : f32 to vector<2x256xf32>
    %78 = arith.select %76, %28, %77 : vector<2x256xi1>, vector<2x256xf32>
    %cst_24 = arith.constant dense<0.000000e+00> : vector<2xf32>
    %79 = vector.multi_reduction <add>, %78, %cst_24 [1] : vector<2x256xf32> to vector<2xf32>
    %80 = vector.shape_cast %79 : vector<2xf32> to vector<2x1xf32>
    %cst_25 = arith.constant 3.125000e-02 : f32
    %81 = vector.broadcast %cst_25 : f32 to vector<2x1xf32>
    %82 = arith.mulf %80, %81 : vector<2x1xf32>
    %cst_26 = arith.constant 0.000000e+00 : f32
    %83 = vector.shape_cast %20 : vector<1x256xi1> to vector<1x256xi1>
    %84 = vector.broadcast %83 : vector<1x256xi1> to vector<2x256xi1>
    %85 = vector.shape_cast %82 : vector<2x1xf32> to vector<2x1xf32>
    %86 = vector.broadcast %85 : vector<2x1xf32> to vector<2x256xf32>
    %87 = vector.broadcast %cst_26 : f32 to vector<2x256xf32>
    %88 = arith.select %84, %86, %87 : vector<2x256xi1>, vector<2x256xf32>
    %89 = arith.addf %74, %88 : vector<2x256xf32>
    %90 = arith.subf %28, %89 : vector<2x256xf32>
    %91 = arith.mulf %90, %90 : vector<2x256xf32>
    %cst_27 = arith.constant 0.000000e+00 : f32
    %92 = vector.broadcast %cst_27 : f32 to vector<2x256xf32>
    %cst_28 = arith.constant 0.000000e+00 : f32
    %93 = vector.shape_cast %5 : vector<1x256xi1> to vector<1x256xi1>
    %94 = vector.broadcast %93 : vector<1x256xi1> to vector<2x256xi1>
    %95 = vector.broadcast %cst_28 : f32 to vector<2x256xf32>
    %96 = arith.select %94, %91, %95 : vector<2x256xi1>, vector<2x256xf32>
    %cst_29 = arith.constant dense<0.000000e+00> : vector<2xf32>
    %97 = vector.multi_reduction <add>, %96, %cst_29 [1] : vector<2x256xf32> to vector<2xf32>
    %98 = vector.shape_cast %97 : vector<2xf32> to vector<2x1xf32>
    %cst_30 = arith.constant 1.562500e-02 : f32
    %99 = vector.broadcast %cst_30 : f32 to vector<2x1xf32>
    %100 = arith.mulf %98, %99 : vector<2x1xf32>
    %cst_31 = arith.constant 0.000000e+00 : f32
    %101 = vector.shape_cast %5 : vector<1x256xi1> to vector<1x256xi1>
    %102 = vector.broadcast %101 : vector<1x256xi1> to vector<2x256xi1>
    %103 = vector.shape_cast %100 : vector<2x1xf32> to vector<2x1xf32>
    %104 = vector.broadcast %103 : vector<2x1xf32> to vector<2x256xf32>
    %105 = vector.broadcast %cst_31 : f32 to vector<2x256xf32>
    %106 = arith.select %102, %104, %105 : vector<2x256xi1>, vector<2x256xf32>
    %107 = arith.addf %92, %106 : vector<2x256xf32>
    %cst_32 = arith.constant 0.000000e+00 : f32
    %108 = vector.shape_cast %10 : vector<1x256xi1> to vector<1x256xi1>
    %109 = vector.broadcast %108 : vector<1x256xi1> to vector<2x256xi1>
    %110 = vector.broadcast %cst_32 : f32 to vector<2x256xf32>
    %111 = arith.select %109, %91, %110 : vector<2x256xi1>, vector<2x256xf32>
    %cst_33 = arith.constant dense<0.000000e+00> : vector<2xf32>
    %112 = vector.multi_reduction <add>, %111, %cst_33 [1] : vector<2x256xf32> to vector<2xf32>
    %113 = vector.shape_cast %112 : vector<2xf32> to vector<2x1xf32>
    %cst_34 = arith.constant 1.562500e-02 : f32
    %114 = vector.broadcast %cst_34 : f32 to vector<2x1xf32>
    %115 = arith.mulf %113, %114 : vector<2x1xf32>
    %cst_35 = arith.constant 0.000000e+00 : f32
    %116 = vector.shape_cast %10 : vector<1x256xi1> to vector<1x256xi1>
    %117 = vector.broadcast %116 : vector<1x256xi1> to vector<2x256xi1>
    %118 = vector.shape_cast %115 : vector<2x1xf32> to vector<2x1xf32>
    %119 = vector.broadcast %118 : vector<2x1xf32> to vector<2x256xf32>
    %120 = vector.broadcast %cst_35 : f32 to vector<2x256xf32>
    %121 = arith.select %117, %119, %120 : vector<2x256xi1>, vector<2x256xf32>
    %122 = arith.addf %107, %121 : vector<2x256xf32>
    %cst_36 = arith.constant 0.000000e+00 : f32
    %123 = vector.shape_cast %15 : vector<1x256xi1> to vector<1x256xi1>
    %124 = vector.broadcast %123 : vector<1x256xi1> to vector<2x256xi1>
    %125 = vector.broadcast %cst_36 : f32 to vector<2x256xf32>
    %126 = arith.select %124, %91, %125 : vector<2x256xi1>, vector<2x256xf32>
    %cst_37 = arith.constant dense<0.000000e+00> : vector<2xf32>
    %127 = vector.multi_reduction <add>, %126, %cst_37 [1] : vector<2x256xf32> to vector<2xf32>
    %128 = vector.shape_cast %127 : vector<2xf32> to vector<2x1xf32>
    %cst_38 = arith.constant 3.125000e-02 : f32
    %129 = vector.broadcast %cst_38 : f32 to vector<2x1xf32>
    %130 = arith.mulf %128, %129 : vector<2x1xf32>
    %cst_39 = arith.constant 0.000000e+00 : f32
    %131 = vector.shape_cast %15 : vector<1x256xi1> to vector<1x256xi1>
    %132 = vector.broadcast %131 : vector<1x256xi1> to vector<2x256xi1>
    %133 = vector.shape_cast %130 : vector<2x1xf32> to vector<2x1xf32>
    %134 = vector.broadcast %133 : vector<2x1xf32> to vector<2x256xf32>
    %135 = vector.broadcast %cst_39 : f32 to vector<2x256xf32>
    %136 = arith.select %132, %134, %135 : vector<2x256xi1>, vector<2x256xf32>
    %137 = arith.addf %122, %136 : vector<2x256xf32>
    %cst_40 = arith.constant 0.000000e+00 : f32
    %138 = vector.shape_cast %20 : vector<1x256xi1> to vector<1x256xi1>
    %139 = vector.broadcast %138 : vector<1x256xi1> to vector<2x256xi1>
    %140 = vector.broadcast %cst_40 : f32 to vector<2x256xf32>
    %141 = arith.select %139, %91, %140 : vector<2x256xi1>, vector<2x256xf32>
    %cst_41 = arith.constant dense<0.000000e+00> : vector<2xf32>
    %142 = vector.multi_reduction <add>, %141, %cst_41 [1] : vector<2x256xf32> to vector<2xf32>
    %143 = vector.shape_cast %142 : vector<2xf32> to vector<2x1xf32>
    %cst_42 = arith.constant 3.125000e-02 : f32
    %144 = vector.broadcast %cst_42 : f32 to vector<2x1xf32>
    %145 = arith.mulf %143, %144 : vector<2x1xf32>
    %cst_43 = arith.constant 0.000000e+00 : f32
    %146 = vector.shape_cast %20 : vector<1x256xi1> to vector<1x256xi1>
    %147 = vector.broadcast %146 : vector<1x256xi1> to vector<2x256xi1>
    %148 = vector.shape_cast %145 : vector<2x1xf32> to vector<2x1xf32>
    %149 = vector.broadcast %148 : vector<2x1xf32> to vector<2x256xf32>
    %150 = vector.broadcast %cst_43 : f32 to vector<2x256xf32>
    %151 = arith.select %147, %149, %150 : vector<2x256xi1>, vector<2x256xf32>
    %152 = arith.addf %137, %151 : vector<2x256xf32>
    %cst_44 = arith.constant 9.99999974E-6 : f32
    %153 = vector.broadcast %cst_44 : f32 to vector<2x256xf32>
    %154 = arith.addf %152, %153 : vector<2x256xf32>
    %155 = math.rsqrt %154 : vector<2x256xf32>
    %156 = arith.mulf %90, %155 : vector<2x256xf32>
    %c1 = arith.constant 1 : index
    %c0_45 = arith.constant 0 : index
    %c0_46 = arith.constant 0 : index
    %157 = vector.load %arg1[%c1, %c0_45, %c0_46] : memref<4x256x256xf32, #tpu.memory_space<vmem>>, vector<1x256x256xf32>
    %158 = vector.shape_cast %157 : vector<1x256x256xf32> to vector<256x256xf32>
    %cst_47 = arith.constant dense<0.000000e+00> : vector<2x256xf32>
    %159 = tpu.matmul %156, %158, %cst_47 {dimension_numbers = #tpu.dot_dimension_numbers<[1], [0], [0], [1], [0, 0, 1, 1], [], []>} : vector<2x256xf32>, vector<256x256xf32>, vector<2x256xf32> -> vector<2x256xf32>
    %160 = arith.addf %21, %159 : vector<2x256xf32>
    %c1_48 = arith.constant 1 : index
    %c0_49 = arith.constant 0 : index
    %c0_50 = arith.constant 0 : index
    %161 = vector.load %arg2[%c1_48, %c0_49, %c0_50] : memref<4x1x256xf32, #tpu.memory_space<vmem>>, vector<1x1x256xf32>
    %162 = vector.shape_cast %161 : vector<1x1x256xf32> to vector<1x256xf32>
    %163 = vector.broadcast %162 : vector<1x256xf32> to vector<2x256xf32>
    %164 = arith.addf %160, %163 : vector<2x256xf32>
    %c2 = arith.constant 2 : index
    %c0_51 = arith.constant 0 : index
    %c0_52 = arith.constant 0 : index
    %165 = vector.load %arg1[%c2, %c0_51, %c0_52] : memref<4x256x256xf32, #tpu.memory_space<vmem>>, vector<1x256x256xf32>
    %166 = vector.shape_cast %165 : vector<1x256x256xf32> to vector<256x256xf32>
    %cst_53 = arith.constant dense<0.000000e+00> : vector<2x256xf32>
    %167 = tpu.matmul %164, %166, %cst_53 {dimension_numbers = #tpu.dot_dimension_numbers<[1], [0], [0], [1], [0, 0, 1, 1], [], []>} : vector<2x256xf32>, vector<256x256xf32>, vector<2x256xf32> -> vector<2x256xf32>
    %c2_54 = arith.constant 2 : index
    %c0_55 = arith.constant 0 : index
    %c0_56 = arith.constant 0 : index
    %168 = vector.load %arg2[%c2_54, %c0_55, %c0_56] : memref<4x1x256xf32, #tpu.memory_space<vmem>>, vector<1x1x256xf32>
    %169 = vector.shape_cast %168 : vector<1x1x256xf32> to vector<1x256xf32>
    %170 = vector.broadcast %169 : vector<1x256xf32> to vector<2x256xf32>
    %171 = arith.addf %167, %170 : vector<2x256xf32>
    %cst_57 = arith.constant 0.000000e+00 : f32
    %172 = vector.broadcast %cst_57 : f32 to vector<2x256xf32>
    %cst_58 = arith.constant 0.000000e+00 : f32
    %173 = vector.shape_cast %5 : vector<1x256xi1> to vector<1x256xi1>
    %174 = vector.broadcast %173 : vector<1x256xi1> to vector<2x256xi1>
    %175 = vector.broadcast %cst_58 : f32 to vector<2x256xf32>
    %176 = arith.select %174, %171, %175 : vector<2x256xi1>, vector<2x256xf32>
    %cst_59 = arith.constant dense<0.000000e+00> : vector<2xf32>
    %177 = vector.multi_reduction <add>, %176, %cst_59 [1] : vector<2x256xf32> to vector<2xf32>
    %178 = vector.shape_cast %177 : vector<2xf32> to vector<2x1xf32>
    %cst_60 = arith.constant 1.562500e-02 : f32
    %179 = vector.broadcast %cst_60 : f32 to vector<2x1xf32>
    %180 = arith.mulf %178, %179 : vector<2x1xf32>
    %cst_61 = arith.constant 0.000000e+00 : f32
    %181 = vector.shape_cast %5 : vector<1x256xi1> to vector<1x256xi1>
    %182 = vector.broadcast %181 : vector<1x256xi1> to vector<2x256xi1>
    %183 = vector.shape_cast %180 : vector<2x1xf32> to vector<2x1xf32>
    %184 = vector.broadcast %183 : vector<2x1xf32> to vector<2x256xf32>
    %185 = vector.broadcast %cst_61 : f32 to vector<2x256xf32>
    %186 = arith.select %182, %184, %185 : vector<2x256xi1>, vector<2x256xf32>
    %187 = arith.addf %172, %186 : vector<2x256xf32>
    %cst_62 = arith.constant 0.000000e+00 : f32
    %188 = vector.shape_cast %10 : vector<1x256xi1> to vector<1x256xi1>
    %189 = vector.broadcast %188 : vector<1x256xi1> to vector<2x256xi1>
    %190 = vector.broadcast %cst_62 : f32 to vector<2x256xf32>
    %191 = arith.select %189, %171, %190 : vector<2x256xi1>, vector<2x256xf32>
    %cst_63 = arith.constant dense<0.000000e+00> : vector<2xf32>
    %192 = vector.multi_reduction <add>, %191, %cst_63 [1] : vector<2x256xf32> to vector<2xf32>
    %193 = vector.shape_cast %192 : vector<2xf32> to vector<2x1xf32>
    %cst_64 = arith.constant 1.562500e-02 : f32
    %194 = vector.broadcast %cst_64 : f32 to vector<2x1xf32>
    %195 = arith.mulf %193, %194 : vector<2x1xf32>
    %cst_65 = arith.constant 0.000000e+00 : f32
    %196 = vector.shape_cast %10 : vector<1x256xi1> to vector<1x256xi1>
    %197 = vector.broadcast %196 : vector<1x256xi1> to vector<2x256xi1>
    %198 = vector.shape_cast %195 : vector<2x1xf32> to vector<2x1xf32>
    %199 = vector.broadcast %198 : vector<2x1xf32> to vector<2x256xf32>
    %200 = vector.broadcast %cst_65 : f32 to vector<2x256xf32>
    %201 = arith.select %197, %199, %200 : vector<2x256xi1>, vector<2x256xf32>
    %202 = arith.addf %187, %201 : vector<2x256xf32>
    %cst_66 = arith.constant 0.000000e+00 : f32
    %203 = vector.shape_cast %15 : vector<1x256xi1> to vector<1x256xi1>
    %204 = vector.broadcast %203 : vector<1x256xi1> to vector<2x256xi1>
    %205 = vector.broadcast %cst_66 : f32 to vector<2x256xf32>
    %206 = arith.select %204, %171, %205 : vector<2x256xi1>, vector<2x256xf32>
    %cst_67 = arith.constant dense<0.000000e+00> : vector<2xf32>
    %207 = vector.multi_reduction <add>, %206, %cst_67 [1] : vector<2x256xf32> to vector<2xf32>
    %208 = vector.shape_cast %207 : vector<2xf32> to vector<2x1xf32>
    %cst_68 = arith.constant 3.125000e-02 : f32
    %209 = vector.broadcast %cst_68 : f32 to vector<2x1xf32>
    %210 = arith.mulf %208, %209 : vector<2x1xf32>
    %cst_69 = arith.constant 0.000000e+00 : f32
    %211 = vector.shape_cast %15 : vector<1x256xi1> to vector<1x256xi1>
    %212 = vector.broadcast %211 : vector<1x256xi1> to vector<2x256xi1>
    %213 = vector.shape_cast %210 : vector<2x1xf32> to vector<2x1xf32>
    %214 = vector.broadcast %213 : vector<2x1xf32> to vector<2x256xf32>
    %215 = vector.broadcast %cst_69 : f32 to vector<2x256xf32>
    %216 = arith.select %212, %214, %215 : vector<2x256xi1>, vector<2x256xf32>
    %217 = arith.addf %202, %216 : vector<2x256xf32>
    %cst_70 = arith.constant 0.000000e+00 : f32
    %218 = vector.shape_cast %20 : vector<1x256xi1> to vector<1x256xi1>
    %219 = vector.broadcast %218 : vector<1x256xi1> to vector<2x256xi1>
    %220 = vector.broadcast %cst_70 : f32 to vector<2x256xf32>
    %221 = arith.select %219, %171, %220 : vector<2x256xi1>, vector<2x256xf32>
    %cst_71 = arith.constant dense<0.000000e+00> : vector<2xf32>
    %222 = vector.multi_reduction <add>, %221, %cst_71 [1] : vector<2x256xf32> to vector<2xf32>
    %223 = vector.shape_cast %222 : vector<2xf32> to vector<2x1xf32>
    %cst_72 = arith.constant 3.125000e-02 : f32
    %224 = vector.broadcast %cst_72 : f32 to vector<2x1xf32>
    %225 = arith.mulf %223, %224 : vector<2x1xf32>
    %cst_73 = arith.constant 0.000000e+00 : f32
    %226 = vector.shape_cast %20 : vector<1x256xi1> to vector<1x256xi1>
    %227 = vector.broadcast %226 : vector<1x256xi1> to vector<2x256xi1>
    %228 = vector.shape_cast %225 : vector<2x1xf32> to vector<2x1xf32>
    %229 = vector.broadcast %228 : vector<2x1xf32> to vector<2x256xf32>
    %230 = vector.broadcast %cst_73 : f32 to vector<2x256xf32>
    %231 = arith.select %227, %229, %230 : vector<2x256xi1>, vector<2x256xf32>
    %232 = arith.addf %217, %231 : vector<2x256xf32>
    %233 = arith.subf %171, %232 : vector<2x256xf32>
    %234 = arith.mulf %233, %233 : vector<2x256xf32>
    %cst_74 = arith.constant 0.000000e+00 : f32
    %235 = vector.broadcast %cst_74 : f32 to vector<2x256xf32>
    %cst_75 = arith.constant 0.000000e+00 : f32
    %236 = vector.shape_cast %5 : vector<1x256xi1> to vector<1x256xi1>
    %237 = vector.broadcast %236 : vector<1x256xi1> to vector<2x256xi1>
    %238 = vector.broadcast %cst_75 : f32 to vector<2x256xf32>
    %239 = arith.select %237, %234, %238 : vector<2x256xi1>, vector<2x256xf32>
    %cst_76 = arith.constant dense<0.000000e+00> : vector<2xf32>
    %240 = vector.multi_reduction <add>, %239, %cst_76 [1] : vector<2x256xf32> to vector<2xf32>
    %241 = vector.shape_cast %240 : vector<2xf32> to vector<2x1xf32>
    %cst_77 = arith.constant 1.562500e-02 : f32
    %242 = vector.broadcast %cst_77 : f32 to vector<2x1xf32>
    %243 = arith.mulf %241, %242 : vector<2x1xf32>
    %cst_78 = arith.constant 0.000000e+00 : f32
    %244 = vector.shape_cast %5 : vector<1x256xi1> to vector<1x256xi1>
    %245 = vector.broadcast %244 : vector<1x256xi1> to vector<2x256xi1>
    %246 = vector.shape_cast %243 : vector<2x1xf32> to vector<2x1xf32>
    %247 = vector.broadcast %246 : vector<2x1xf32> to vector<2x256xf32>
    %248 = vector.broadcast %cst_78 : f32 to vector<2x256xf32>
    %249 = arith.select %245, %247, %248 : vector<2x256xi1>, vector<2x256xf32>
    %250 = arith.addf %235, %249 : vector<2x256xf32>
    %cst_79 = arith.constant 0.000000e+00 : f32
    %251 = vector.shape_cast %10 : vector<1x256xi1> to vector<1x256xi1>
    %252 = vector.broadcast %251 : vector<1x256xi1> to vector<2x256xi1>
    %253 = vector.broadcast %cst_79 : f32 to vector<2x256xf32>
    %254 = arith.select %252, %234, %253 : vector<2x256xi1>, vector<2x256xf32>
    %cst_80 = arith.constant dense<0.000000e+00> : vector<2xf32>
    %255 = vector.multi_reduction <add>, %254, %cst_80 [1] : vector<2x256xf32> to vector<2xf32>
    %256 = vector.shape_cast %255 : vector<2xf32> to vector<2x1xf32>
    %cst_81 = arith.constant 1.562500e-02 : f32
    %257 = vector.broadcast %cst_81 : f32 to vector<2x1xf32>
    %258 = arith.mulf %256, %257 : vector<2x1xf32>
    %cst_82 = arith.constant 0.000000e+00 : f32
    %259 = vector.shape_cast %10 : vector<1x256xi1> to vector<1x256xi1>
    %260 = vector.broadcast %259 : vector<1x256xi1> to vector<2x256xi1>
    %261 = vector.shape_cast %258 : vector<2x1xf32> to vector<2x1xf32>
    %262 = vector.broadcast %261 : vector<2x1xf32> to vector<2x256xf32>
    %263 = vector.broadcast %cst_82 : f32 to vector<2x256xf32>
    %264 = arith.select %260, %262, %263 : vector<2x256xi1>, vector<2x256xf32>
    %265 = arith.addf %250, %264 : vector<2x256xf32>
    %cst_83 = arith.constant 0.000000e+00 : f32
    %266 = vector.shape_cast %15 : vector<1x256xi1> to vector<1x256xi1>
    %267 = vector.broadcast %266 : vector<1x256xi1> to vector<2x256xi1>
    %268 = vector.broadcast %cst_83 : f32 to vector<2x256xf32>
    %269 = arith.select %267, %234, %268 : vector<2x256xi1>, vector<2x256xf32>
    %cst_84 = arith.constant dense<0.000000e+00> : vector<2xf32>
    %270 = vector.multi_reduction <add>, %269, %cst_84 [1] : vector<2x256xf32> to vector<2xf32>
    %271 = vector.shape_cast %270 : vector<2xf32> to vector<2x1xf32>
    %cst_85 = arith.constant 3.125000e-02 : f32
    %272 = vector.broadcast %cst_85 : f32 to vector<2x1xf32>
    %273 = arith.mulf %271, %272 : vector<2x1xf32>
    %cst_86 = arith.constant 0.000000e+00 : f32
    %274 = vector.shape_cast %15 : vector<1x256xi1> to vector<1x256xi1>
    %275 = vector.broadcast %274 : vector<1x256xi1> to vector<2x256xi1>
    %276 = vector.shape_cast %273 : vector<2x1xf32> to vector<2x1xf32>
    %277 = vector.broadcast %276 : vector<2x1xf32> to vector<2x256xf32>
    %278 = vector.broadcast %cst_86 : f32 to vector<2x256xf32>
    %279 = arith.select %275, %277, %278 : vector<2x256xi1>, vector<2x256xf32>
    %280 = arith.addf %265, %279 : vector<2x256xf32>
    %cst_87 = arith.constant 0.000000e+00 : f32
    %281 = vector.shape_cast %20 : vector<1x256xi1> to vector<1x256xi1>
    %282 = vector.broadcast %281 : vector<1x256xi1> to vector<2x256xi1>
    %283 = vector.broadcast %cst_87 : f32 to vector<2x256xf32>
    %284 = arith.select %282, %234, %283 : vector<2x256xi1>, vector<2x256xf32>
    %cst_88 = arith.constant dense<0.000000e+00> : vector<2xf32>
    %285 = vector.multi_reduction <add>, %284, %cst_88 [1] : vector<2x256xf32> to vector<2xf32>
    %286 = vector.shape_cast %285 : vector<2xf32> to vector<2x1xf32>
    %cst_89 = arith.constant 3.125000e-02 : f32
    %287 = vector.broadcast %cst_89 : f32 to vector<2x1xf32>
    %288 = arith.mulf %286, %287 : vector<2x1xf32>
    %cst_90 = arith.constant 0.000000e+00 : f32
    %289 = vector.shape_cast %20 : vector<1x256xi1> to vector<1x256xi1>
    %290 = vector.broadcast %289 : vector<1x256xi1> to vector<2x256xi1>
    %291 = vector.shape_cast %288 : vector<2x1xf32> to vector<2x1xf32>
    %292 = vector.broadcast %291 : vector<2x1xf32> to vector<2x256xf32>
    %293 = vector.broadcast %cst_90 : f32 to vector<2x256xf32>
    %294 = arith.select %290, %292, %293 : vector<2x256xi1>, vector<2x256xf32>
    %295 = arith.addf %280, %294 : vector<2x256xf32>
    %cst_91 = arith.constant 9.99999974E-6 : f32
    %296 = vector.broadcast %cst_91 : f32 to vector<2x256xf32>
    %297 = arith.addf %295, %296 : vector<2x256xf32>
    %298 = math.rsqrt %297 : vector<2x256xf32>
    %299 = arith.mulf %233, %298 : vector<2x256xf32>
    %c3 = arith.constant 3 : index
    %c0_92 = arith.constant 0 : index
    %c0_93 = arith.constant 0 : index
    %300 = vector.load %arg1[%c3, %c0_92, %c0_93] : memref<4x256x256xf32, #tpu.memory_space<vmem>>, vector<1x256x256xf32>
    %301 = vector.shape_cast %300 : vector<1x256x256xf32> to vector<256x256xf32>
    %cst_94 = arith.constant dense<0.000000e+00> : vector<2x256xf32>
    %302 = tpu.matmul %299, %301, %cst_94 {dimension_numbers = #tpu.dot_dimension_numbers<[1], [0], [0], [1], [0, 0, 1, 1], [], []>} : vector<2x256xf32>, vector<256x256xf32>, vector<2x256xf32> -> vector<2x256xf32>
    %303 = arith.addf %164, %302 : vector<2x256xf32>
    %c3_95 = arith.constant 3 : index
    %c0_96 = arith.constant 0 : index
    %c0_97 = arith.constant 0 : index
    %304 = vector.load %arg2[%c3_95, %c0_96, %c0_97] : memref<4x1x256xf32, #tpu.memory_space<vmem>>, vector<1x1x256xf32>
    %305 = vector.shape_cast %304 : vector<1x1x256xf32> to vector<1x256xf32>
    %306 = vector.broadcast %305 : vector<1x256xf32> to vector<2x256xf32>
    %307 = arith.addf %303, %306 : vector<2x256xf32>
    %c0_98 = arith.constant 0 : index
    %c0_99 = arith.constant 0 : index
    %308 = vector.load %arg3[%c0_98, %c0_99] : memref<2x256xf32, #tpu.memory_space<vmem>>, vector<2x256xf32>
    tpu.vector_store %arg3[%c0_98, %c0_99], %307 {strides = array<i32>} : memref<2x256xf32, #tpu.memory_space<vmem>>, vector<2x256xf32>,
    return
  }
}

</mosaic_0001>

<bundles_post_ra>
// kernel: custom-call.1
= control target key start
LH: loop header
LB: loop body
LE: loop exit
PB: predicated region body
PF: predicated region fallthrough
CT: control target
= control target key end

     0   :  { %s59_s0 = inlined_call_operand.hbm [shape: c64[2,9,32], index: 0, kind: input, shape index: {}]   ;;  %s60_s1 = inlined_call_operand.vmem [shape: f32[2,9,32], index: 1, kind: output, shape index: {}]  }
   0x1   :  { %s2_s8 = scalar_lea.hbm %s59_s0, 288 }
   0x2   :  { %3 = vsyncpa [#allocation0], 0  ;;  %s4_s11 = sshll.u32 %s60_s1, 4  ;;  %s34_s14 = scalar_lea.hbm %s59_s0, 576  ;;  %s5_s11 = int_to_ptr.vmem [resolvable:$true] %s4_s11 }
   0x3   :  { %p11_p0 = scmp.ne.s32.totalorder %s2_s8, %s34_s14  ;;  %p13_p1 = scmp.lt.u32.totalorder %s2_s8, %s59_s0 }
   0x4   :  { %p14_p2 = scmp.lt.u32.totalorder %s34_s14, %s34_s14  ;;  %p16_p4 = scmp.lt.u32.totalorder %s34_s14, %s2_s8 }
   0x6   :  { %p15_p3 = por %p14_p2, %p13_p1 }
   0x8   :  { %p17_p5 = por %p16_p4, %p15_p3 }
   0xa   :  { %p18_p6 = pnand %p17_p5, %p11_p0 }
   0xc   :  { %21 = shalt.err (!%p18_p6)  }
   0xd   :  { %s22_s17 = scalar_lea.vmem %s5_s11, 288  ;;  %p27_p8 = scmp.lt.s32.totalorder %s5_s11, %s5_s11 }
   0xe   :  { %p23_p7 = scmp.ne.s32.totalorder %s5_s11, %s22_s17  ;;  %p28_p9 = scmp.lt.s32.totalorder %s22_s17, %s22_s17 }
  0x10   :  { %p29_p10 = por %p28_p9, %p27_p8 }
  0x12   :  { %p30_p11 = pnand %p29_p10, %p23_p7 }
  0x14   :  { %33 = shalt.err (!%p30_p11)  }
  0x15   :  { %7 = dma.hbm_to_vmem [thread:$0]  %s2_s8, 288, %s5_s11, [#allocation0] }
  0x16   :  { %35 = dma.done.wait [#allocation0], 288  }
  0x17   :  { %36 = vsyncadd [#allocation0], 4294967008 }
  0x18   :  { %9 = vsyncpa [#allocation0], 1 }

// kernel: custom-call.3
= control target key start
LH: loop header
LB: loop body
LE: loop exit
PB: predicated region body
PF: predicated region fallthrough
CT: control target
= control target key end

     0   :  { %s59_s0 = inlined_call_operand.hbm [shape: c64[2,5,64], index: 0, kind: input, shape index: {}]   ;;  %s60_s1 = inlined_call_operand.vmem [shape: f32[2,5,64], index: 1, kind: output, shape index: {}]  }
   0x1   :  { %s2_s8 = scalar_lea.hbm %s59_s0, 160 }
   0x2   :  { %3 = vsyncpa [#allocation0], 0  ;;  %s4_s11 = sshll.u32 %s60_s1, 4  ;;  %s34_s14 = scalar_lea.hbm %s59_s0, 320  ;;  %s5_s11 = int_to_ptr.vmem [resolvable:$true] %s4_s11 }
   0x3   :  { %p11_p0 = scmp.ne.s32.totalorder %s2_s8, %s34_s14  ;;  %p13_p1 = scmp.lt.u32.totalorder %s2_s8, %s59_s0 }
   0x4   :  { %p14_p2 = scmp.lt.u32.totalorder %s34_s14, %s34_s14  ;;  %p16_p4 = scmp.lt.u32.totalorder %s34_s14, %s2_s8 }
   0x6   :  { %p15_p3 = por %p14_p2, %p13_p1 }
   0x8   :  { %p17_p5 = por %p16_p4, %p15_p3 }
   0xa   :  { %p18_p6 = pnand %p17_p5, %p11_p0 }
   0xc   :  { %21 = shalt.err (!%p18_p6)  }
   0xd   :  { %s22_s17 = scalar_lea.vmem %s5_s11, 160  ;;  %p27_p8 = scmp.lt.s32.totalorder %s5_s11, %s5_s11 }
   0xe   :  { %p23_p7 = scmp.ne.s32.totalorder %s5_s11, %s22_s17  ;;  %p28_p9 = scmp.lt.s32.totalorder %s22_s17, %s22_s17 }
  0x10   :  { %p29_p10 = por %p28_p9, %p27_p8 }
  0x12   :  { %p30_p11 = pnand %p29_p10, %p23_p7 }
  0x14   :  { %33 = shalt.err (!%p30_p11)  }
  0x15   :  { %7 = dma.hbm_to_vmem [thread:$0]  %s2_s8, 160, %s5_s11, [#allocation0] }
  0x16   :  { %35 = dma.done.wait [#allocation0], 160  }
  0x17   :  { %36 = vsyncadd [#allocation0], 4294967136 }
  0x18   :  { %9 = vsyncpa [#allocation0], 1 }

// kernel: custom-call.2
= control target key start
LH: loop header
LB: loop body
LE: loop exit
PB: predicated region body
PF: predicated region fallthrough
CT: control target
= control target key end

     0   :  { %2 = vsyncpa [#allocation0], 0  ;;  %s61_s0 = inlined_call_operand.hbm [shape: c64[2,5,64], index: 0, kind: input, shape index: {}]   ;;  %s62_s1 = inlined_call_operand.vmem [shape: f32[2,5,64], index: 1, kind: output, shape index: {}]  }
   0x1   :  { %s3_s8 = sshll.u32 %s62_s1, 4  ;;  %s9_s11 = scalar_lea.hbm %s61_s0, 160  ;;  %s4_s8 = int_to_ptr.vmem [resolvable:$true] %s3_s8 }
   0x2   :  { %p10_p0 = scmp.ne.s32.totalorder %s61_s0, %s9_s11  ;;  %s11_s16 = scalar_lea.hbm %s61_s0, 320 }
   0x3   :  { %p12_p1 = scmp.lt.u32.totalorder %s11_s16, %s9_s11  ;;  %p13_p2 = scmp.lt.u32.totalorder %s9_s11, %s61_s0 }
   0x5   :  { %p14_p3 = por %p13_p2, %p12_p1 }
   0x7   :  { %p15_p4 = pnand %p14_p3, %p10_p0 }
   0x9   :  { %18 = shalt.err (!%p15_p4)  }
   0xa   :  { %s19_s1 = scalar_lea.vmem %s4_s8, 160  ;;  %p24_p6 = scmp.lt.s32.totalorder %s4_s8, %s4_s8 }
   0xb   :  { %p20_p5 = scmp.ne.s32.totalorder %s4_s8, %s19_s1  ;;  %p25_p7 = scmp.lt.s32.totalorder %s19_s1, %s19_s1 }
   0xd   :  { %p26_p8 = por %p25_p7, %p24_p6 }
   0xf   :  { %p27_p9 = pnand %p26_p8, %p20_p5 }
  0x11   :  { %30 = shalt.err (!%p27_p9)  }
  0x12   :  { %6 = dma.hbm_to_vmem [thread:$0]  %s61_s0, 160, %s4_s8, [#allocation0] }
  0x13   :  { %31 = dma.done.wait [#allocation0], 160  }
  0x14   :  { %32 = vsyncadd [#allocation0], 4294967136 }
  0x15   :  { %8 = vsyncpa [#allocation0], 1 }

// kernel: custom-call
= control target key start
LH: loop header
LB: loop body
LE: loop exit
PB: predicated region body
PF: predicated region fallthrough
CT: control target
= control target key end

     0   :  { %2 = vsyncpa [#allocation0], 0  ;;  %s61_s0 = inlined_call_operand.hbm [shape: c64[2,9,32], index: 0, kind: input, shape index: {}]   ;;  %s62_s1 = inlined_call_operand.vmem [shape: f32[2,9,32], index: 1, kind: output, shape index: {}]  }
   0x1   :  { %s3_s8 = sshll.u32 %s62_s1, 4  ;;  %s9_s11 = scalar_lea.hbm %s61_s0, 288  ;;  %s4_s8 = int_to_ptr.vmem [resolvable:$true] %s3_s8 }
   0x2   :  { %p10_p0 = scmp.ne.s32.totalorder %s61_s0, %s9_s11  ;;  %s11_s16 = scalar_lea.hbm %s61_s0, 576 }
   0x3   :  { %p12_p1 = scmp.lt.u32.totalorder %s11_s16, %s9_s11  ;;  %p13_p2 = scmp.lt.u32.totalorder %s9_s11, %s61_s0 }
   0x5   :  { %p14_p3 = por %p13_p2, %p12_p1 }
   0x7   :  { %p15_p4 = pnand %p14_p3, %p10_p0 }
   0x9   :  { %18 = shalt.err (!%p15_p4)  }
   0xa   :  { %s19_s1 = scalar_lea.vmem %s4_s8, 288  ;;  %p24_p6 = scmp.lt.s32.totalorder %s4_s8, %s4_s8 }
   0xb   :  { %p20_p5 = scmp.ne.s32.totalorder %s4_s8, %s19_s1  ;;  %p25_p7 = scmp.lt.s32.totalorder %s19_s1, %s19_s1 }
   0xd   :  { %p26_p8 = por %p25_p7, %p24_p6 }
   0xf   :  { %p27_p9 = pnand %p26_p8, %p20_p5 }
  0x11   :  { %30 = shalt.err (!%p27_p9)  }
  0x12   :  { %6 = dma.hbm_to_vmem [thread:$0]  %s61_s0, 288, %s4_s8, [#allocation0] }
  0x13   :  { %31 = dma.done.wait [#allocation0], 288  }
  0x14   :  { %32 = vsyncadd [#allocation0], 4294967008 }
  0x15   :  { %8 = vsyncpa [#allocation0], 1 }

// kernel: custom-call.5
= control target key start
LH: loop header
LB: loop body
LE: loop exit
PB: predicated region body
PF: predicated region fallthrough
CT: control target
= control target key end

     0   :  { %s126_s0 = inlined_call_operand.vmem [shape: f32[2,5,64], index: 0, kind: input, shape index: {}]   ;;  %s127_s1 = inlined_call_operand.vmem [shape: f32[2,5,64], index: 1, kind: input, shape index: {}]   ;;  %s128_s2 = inlined_call_operand.hbm [shape: c64[2,5,64], index: 2, kind: output, shape index: {}]  }
   0x1   :  { %s87_s11 = scalar_lea.hbm %s128_s2, 160 }
   0x2   :  { %4 = vsyncpa [#allocation0], 0  ;;  %s5_s14 = sshll.u32 %s126_s0, 4  ;;  %s6_s14 = int_to_ptr.vmem [resolvable:$true] %s5_s14 }
   0x3   :  { %s18_s15 = scalar_lea.vmem %s6_s14, 160  ;;  %p23_p1 = scmp.lt.s32.totalorder %s6_s14, %s6_s14 }
   0x4   :  { %p19_p0 = scmp.ne.s32.totalorder %s6_s14, %s18_s15  ;;  %p24_p2 = scmp.lt.s32.totalorder %s18_s15, %s18_s15 }
   0x6   :  { %p25_p3 = por %p24_p2, %p23_p1 }
   0x8   :  { %p26_p4 = pnand %p25_p3, %p19_p0 }
   0xa   :  { %29 = shalt.err (!%p26_p4)  }
   0xb   :  { %p31_p5 = scmp.ne.s32.totalorder %s128_s2, %s87_s11  ;;  %s32_s0 = scalar_lea.hbm %s128_s2, 320 }
   0xc   :  { %p33_p6 = scmp.lt.u32.totalorder %s32_s0, %s87_s11  ;;  %p34_p7 = scmp.lt.u32.totalorder %s87_s11, %s128_s2 }
   0xe   :  { %p35_p8 = por %p34_p7, %p33_p6 }
  0x10   :  { %p36_p9 = pnand %p35_p8, %p31_p5 }
  0x12   :  { %39 = shalt.err (!%p36_p9)  }
  0x13   :  { %8 = dma.vmem_to_hbm [thread:$0]  %s6_s14, 160, %s128_s2, [#allocation0] }
  0x14   :  { %65 = dma.done.wait [#allocation0], 160  }
  0x15   :  { %66 = vsyncadd [#allocation0], 4294967136 }
  0x16   :  { %10 = vsyncpa [#allocation0], 1 }
  0x17   :  { %11 = vsyncpa [#allocation1], 0  ;;  %s12_s28 = sshll.u32 %s127_s1, 4  ;;  %s13_s28 = int_to_ptr.vmem [resolvable:$true] %s12_s28 }
  0x18   :  { %s40_s29 = scalar_lea.vmem %s13_s28, 160  ;;  %p45_p11 = scmp.lt.s32.totalorder %s13_s28, %s13_s28 }
  0x19   :  { %p41_p10 = scmp.ne.s32.totalorder %s13_s28, %s40_s29  ;;  %p46_p12 = scmp.lt.s32.totalorder %s40_s29, %s40_s29 }
  0x1b   :  { %p47_p13 = por %p46_p12, %p45_p11 }
  0x1d   :  { %p48_p0 = pnand %p47_p13, %p41_p10 }
  0x1f   :  { %51 = shalt.err (!%p48_p0)  }
  0x20   :  { %p53_p1 = scmp.ne.s32.totalorder %s87_s11, %s32_s0  ;;  %p56_p2 = scmp.lt.u32.totalorder %s32_s0, %s32_s0 }
  0x22   :  { %p57_p3 = por %p56_p2, %p34_p7 }
  0x24   :  { %p59_p4 = por %p57_p3, %p33_p6 }
  0x26   :  { %p60_p5 = pnand %p59_p4, %p53_p1 }
  0x28   :  { %63 = shalt.err (!%p60_p5)  }
  0x29   :  { %15 = dma.vmem_to_hbm [thread:$0]  %s13_s28, 160, %s87_s11, [#allocation1] }
  0x2a   :  { %67 = dma.done.wait [#allocation1], 160  }
  0x2b   :  { %68 = vsyncadd [#allocation1], 4294967136 }
  0x2c   :  { %17 = vsyncpa [#allocation1], 1 }

// kernel: custom-call.4
= control target key start
LH: loop header
LB: loop body
LE: loop exit
PB: predicated region body
PF: predicated region fallthrough
CT: control target
= control target key end

     0   :  { %s126_s0 = inlined_call_operand.vmem [shape: f32[2,9,32], index: 0, kind: input, shape index: {}]   ;;  %s127_s1 = inlined_call_operand.vmem [shape: f32[2,9,32], index: 1, kind: input, shape index: {}]   ;;  %s128_s2 = inlined_call_operand.hbm [shape: c64[2,9,32], index: 2, kind: output, shape index: {}]  }
   0x1   :  { %s87_s11 = scalar_lea.hbm %s128_s2, 288 }
   0x2   :  { %4 = vsyncpa [#allocation0], 0  ;;  %s5_s14 = sshll.u32 %s126_s0, 4  ;;  %s6_s14 = int_to_ptr.vmem [resolvable:$true] %s5_s14 }
   0x3   :  { %s18_s15 = scalar_lea.vmem %s6_s14, 288  ;;  %p23_p1 = scmp.lt.s32.totalorder %s6_s14, %s6_s14 }
   0x4   :  { %p19_p0 = scmp.ne.s32.totalorder %s6_s14, %s18_s15  ;;  %p24_p2 = scmp.lt.s32.totalorder %s18_s15, %s18_s15 }
   0x6   :  { %p25_p3 = por %p24_p2, %p23_p1 }
   0x8   :  { %p26_p4 = pnand %p25_p3, %p19_p0 }
   0xa   :  { %29 = shalt.err (!%p26_p4)  }
   0xb   :  { %p31_p5 = scmp.ne.s32.totalorder %s128_s2, %s87_s11  ;;  %s32_s0 = scalar_lea.hbm %s128_s2, 576 }
   0xc   :  { %p33_p6 = scmp.lt.u32.totalorder %s32_s0, %s87_s11  ;;  %p34_p7 = scmp.lt.u32.totalorder %s87_s11, %s128_s2 }
   0xe   :  { %p35_p8 = por %p34_p7, %p33_p6 }
  0x10   :  { %p36_p9 = pnand %p35_p8, %p31_p5 }
  0x12   :  { %39 = shalt.err (!%p36_p9)  }
  0x13   :  { %8 = dma.vmem_to_hbm [thread:$0]  %s6_s14, 288, %s128_s2, [#allocation0] }
  0x14   :  { %65 = dma.done.wait [#allocation0], 288  }
  0x15   :  { %66 = vsyncadd [#allocation0], 4294967008 }
  0x16   :  { %10 = vsyncpa [#allocation0], 1 }
  0x17   :  { %11 = vsyncpa [#allocation1], 0  ;;  %s12_s28 = sshll.u32 %s127_s1, 4  ;;  %s13_s28 = int_to_ptr.vmem [resolvable:$true] %s12_s28 }
  0x18   :  { %s40_s29 = scalar_lea.vmem %s13_s28, 288  ;;  %p45_p11 = scmp.lt.s32.totalorder %s13_s28, %s13_s28 }
  0x19   :  { %p41_p10 = scmp.ne.s32.totalorder %s13_s28, %s40_s29  ;;  %p46_p12 = scmp.lt.s32.totalorder %s40_s29, %s40_s29 }
  0x1b   :  { %p47_p13 = por %p46_p12, %p45_p11 }
  0x1d   :  { %p48_p0 = pnand %p47_p13, %p41_p10 }
  0x1f   :  { %51 = shalt.err (!%p48_p0)  }
  0x20   :  { %p53_p1 = scmp.ne.s32.totalorder %s87_s11, %s32_s0  ;;  %p56_p2 = scmp.lt.u32.totalorder %s32_s0, %s32_s0 }
  0x22   :  { %p57_p3 = por %p56_p2, %p34_p7 }
  0x24   :  { %p59_p4 = por %p57_p3, %p33_p6 }
  0x26   :  { %p60_p5 = pnand %p59_p4, %p53_p1 }
  0x28   :  { %63 = shalt.err (!%p60_p5)  }
  0x29   :  { %15 = dma.vmem_to_hbm [thread:$0]  %s13_s28, 288, %s87_s11, [#allocation1] }
  0x2a   :  { %67 = dma.done.wait [#allocation1], 288  }
  0x2b   :  { %68 = vsyncadd [#allocation1], 4294967008 }
  0x2c   :  { %17 = vsyncpa [#allocation1], 1 }

// kernel: fwd.1
= control target key start
LH: loop header
LB: loop body
LE: loop exit
PB: predicated region body
PF: predicated region fallthrough
CT: control target
= control target key end

     0   :  { %8 = vsyncpa [#allocation3], 0  ;;  %s1242_s12 = smov [#allocation2]   ;;  %s1470_s0 = inlined_call_operand.vmem [shape: f32[2,256], index: 0, kind: input, shape index: {}]   ;;  %s1471_s1 = inlined_call_operand.hbm [shape: f32[4,256,256], index: 1, kind: input, shape index: {}]   ;;  %s1472_s2 = inlined_call_operand.vmem [shape: f32[4,1,256], index: 2, kind: input, shape index: {}]   ;;  %s1473_s3 = inlined_call_operand.vmem [shape: f32[2,256], index: 3, kind: output, shape index: {}]  }
   0x1   :  { %s16_s13 = sshll.u32 %s1242_s12, 4  ;;  %s1218_s16 = scalar_lea.hbm %s1471_s1, 32768  ;;  %s17_s13 = int_to_ptr.vmem [resolvable:$true] %s16_s13 }
   0x2   :  { %p1219_p0 = scmp.ne.s32.totalorder %s1471_s1, %s1218_s16  ;;  %p1222_p1 = scmp.lt.u32.totalorder %s1218_s16, %s1471_s1 }
   0x4   :  { %p1224_p2 = pnand %p1222_p1, %p1219_p0 }
   0x6   :  { %1227 = shalt.err (!%p1224_p2)
}
   0x7   :  { %s1228_s21 = scalar_lea.vmem %s17_s13, 32768  ;;  %p1233_p4 = scmp.lt.s32.totalorder %s17_s13, %s17_s13 }
   0x8   :  { %p1229_p3 = scmp.ne.s32.totalorder %s17_s13, %s1228_s21  ;;  %p1234_p5 = scmp.lt.s32.totalorder %s1228_s21, %s1228_s21 }
   0xa   :  { %p1235_p6 = por %p1234_p5, %p1233_p4 }
   0xc   :  { %p1236_p7 = pnand %p1235_p6, %p1229_p3 }
   0xe   :  { %1239 = shalt.err (!%p1236_p7)
}
   0xf   :  { %s1243_s22 = smov 256   ;;  %s1244_s23 = smov 16  }
  0x10   :  { %22 = dma.hbm_to_vmem [thread:$0]  %s1471_s1, 32768, %s17_s13, [#allocation3], %s1243_s22, %s1243_s22, %s1244_s23  }
  0x11   :  { %1240 = dma.done.wait [#allocation3], 32768  }
  0x12   :  { %1241 = vsyncadd [#allocation3], 4294934528  ;;  %v57_v0 = vld [vmem:[#allocation2 + $0x8] sm:$0xff]  ;;  %v59_v1 = vld [vmem:[#allocation2 + $0x18] sm:$0xff]  ;;  %v28_v25 = vlaneseq  ;;  %v1245_v26 = vmov 1983009808  }
  0x13   :  { %v56_v2 = vld [vmem:[#allocation2] sm:$0xff]  ;;  %v950_v3 = vpack.c.bf16 %v59_v1, %v57_v0  ;;  %v58_v4 = vld [vmem:[#allocation2 + $0x10] sm:$0xff]  ;;  %v61_v5 = vld [vmem:[#allocation2 + $0x28] sm:$0xff]  ;;  %v134_v27 = vunpack.c.l.s4 %v1245_v26  ;;  %vm220_vm3 = vcmask 1041408  }
  0x14   :  { %v63_v6 = vld [vmem:[#allocation2 + $0x38] sm:$0xff]  ;;  %v952_v7 = vpack.c.bf16 %v58_v4, %v56_v2  ;;  %v60_v9 = vld [vmem:[#allocation2 + $0x20] sm:$0xff]  ;;  %v62_v10 = vld [vmem:[#allocation2 + $0x30] sm:$0xff]  ;;  %v1279_v34 = vshrl.u32 %v28_v25, 7 }
  0x15   :  { %v954_v8 = vpack.c.bf16 %v63_v6, %v61_v5  ;;  %v65_v11 = vld [vmem:[#allocation2 + $0x48] sm:$0xff]  ;;  %951 = vmatprep.subr.bf16.mxu0 %v950_v3  ;;  %v67_v12 = vld [vmem:[#allocation2 + $0x58] sm:$0xff]  ;;  %v956_v13 = vpack.c.bf16 %v62_v10, %v60_v9  ;;  %v64_v15 = vld [vmem:[#allocation2 + $0x40] sm:$0xff]  ;;  %v135_v35 = vunpack.c.0.s8 %v134_v27 }
  0x16   :  { %953 = vmatpush1.bf16.msra.mxu0 %v952_v7  ;;  %v958_v14 = vpack.c.bf16 %v67_v12, %v65_v11  ;;  %v66_v16 = vld [vmem:[#allocation2 + $0x50] sm:$0xff]  ;;  %v69_v17 = vld [vmem:[#allocation2 + $0x68] sm:$0xff]  ;;  %v71_v18 = vld [vmem:[#allocation2 + $0x78] sm:$0xff] }
  0x17   :  { %955 = vmatprep.subr.bf16.mxu0 %v954_v8  ;;  %v960_v19 = vpack.c.bf16 %v66_v16, %v64_v15  ;;  %v962_v20 = vpack.c.bf16 %v71_v18, %v69_v17  ;;  %v68_v21 = vld [vmem:[#allocation2 + $0x60] sm:$0xff]  ;;  %v70_v22 = vld [vmem:[#allocation2 + $0x70] sm:$0xff]  ;;  %v73_v23 = vld [vmem:[#allocation2 + $0x88] sm:$0xff]  ;;  %v1282_v42 = vsub.s32 %v135_v35, %v1279_v34 }
  0x18   :  { %v75_v24 = vld [vmem:[#allocation2 + $0x98] sm:$0xff]  ;;  %v964_v28 = vpack.c.bf16 %v70_v22, %v68_v21  ;;  %v72_v30 = vld [vmem:[#allocation2 + $0x80] sm:$0xff]  ;;  %v74_v31 = vld [vmem:[#allocation2 + $0x90] sm:$0xff] }
  0x19   :  { %v966_v29 = vpack.c.bf16 %v75_v24, %v73_v23  ;;  %v77_v32 = vld [vmem:[#allocation2 + $0xa8] sm:$0xff]  ;;  %v79_v33 = vld [vmem:[#allocation2 + $0xb8] sm:$0xff]  ;;  %v968_v36 = vpack.c.bf16 %v74_v31, %v72_v30  ;;  %v76_v38 = vld [vmem:[#allocation2 + $0xa0] sm:$0xff] }
  0x1a   :  { %957 = vmatpush1.bf16.msra.mxu0 %v956_v13  ;;  %v970_v37 = vpack.c.bf16 %v79_v33, %v77_v32  ;;  %v78_v39 = vld [vmem:[#allocation2 + $0xb0] sm:$0xff]  ;;  %v81_v40 = vld [vmem:[#allocation2 + $0xc8] sm:$0xff]  ;;  %v83_v41 = vld [vmem:[#allocation2 + $0xd8] sm:$0xff] }
  0x1b   :  { %959 = vmatprep.subr.bf16.mxu0 %v958_v14  ;;  %v972_v43 = vpack.c.bf16 %v78_v39, %v76_v38  ;;  %v974_v44 = vpack.c.bf16 %v83_v41, %v81_v40  ;;  %v80_v45 = vld [vmem:[#allocation2 + $0xc0] sm:$0xff]  ;;  %v82_v46 = vld [vmem:[#allocation2 + $0xd0] sm:$0xff]  ;;  %v85_v48 = vld [vmem:[#allocation2 + $0xe8] sm:$0xff] }
  0x1c   :  { %v1287_v47 = vld [vmem:[%s1470_s0] sm:$0xf]  ;;  %v87_v49 = vld [vmem:[#allocation2 + $0xf8] sm:$0xff]  ;;  %v976_v51 = vpack.c.bf16 %v82_v46, %v80_v45  ;;  %v86_v55 = vld [vmem:[#allocation2 + $0xf0] sm:$0xff]  ;;  %v1300_v45 = vsub.s32 0, %v1279_v34 }
  0x1d   :  { %v1291_v50 = vrot.slane %v1287_v47, %v1282_v42  ;;  %v978_v53 = vpack.c.bf16 %v87_v49, %v85_v48  ;;  %v84_v54 = vld [vmem:[#allocation2 + $0xe0] sm:$0xff]  ;;  %v89_v56 = vld [vmem:[#allocation2 + $0x108] sm:$0xff]  ;;  %v91_v57 = vld [vmem:[#allocation2 + $0x118] sm:$0xff]  ;;  %v1306_v48 = vsub.s32 1, %v1279_v34 }
  0x1e   :  { %961 = vmatpush1.bf16.msra.mxu0 %v960_v19  ;;  %v980_v58 = vpack.c.bf16 %v86_v55, %v84_v54  ;;  %v982_v59 = vpack.c.bf16 %v91_v57, %v89_v56  ;;  %v88_v60 = vld [vmem:[#allocation2 + $0x100] sm:$0xff]  ;;  %v90_v61 = vld [vmem:[#allocation2 + $0x110] sm:$0xff]  ;;  %v93_v62 = vld [vmem:[#allocation2 + $0x128] sm:$0xff] }
  0x1f   :  { %963 = vmatprep.subr.bf16.mxu0 %v962_v20  ;;  %v140_v52 = vcombine.high %v1291_v50, %v1291_v50  ;;  %v95_v63 = vld [vmem:[#allocation2 + $0x138] sm:$0xff]  ;;  %v984_v0 = vpack.c.bf16 %v90_v61, %v88_v60  ;;  %v92_v2 = vld [vmem:[#allocation2 + $0x120] sm:$0xff]  ;;  %v94_v3 = vld [vmem:[#allocation2 + $0x130] sm:$0xff] }
  0x20   :  { %v986_v1 = vpack.c.bf16 %v95_v63, %v93_v62  ;;  %v97_v4 = vld [vmem:[#allocation2 + $0x148] sm:$0xff]  ;;  %v99_v5 = vld [vmem:[#allocation2 + $0x158] sm:$0xff]  ;;  %v988_v6 = vpack.c.bf16 %v94_v3, %v92_v2  ;;  %v96_v8 = vld [vmem:[#allocation2 + $0x140] sm:$0xff] }
  0x21   :  { %207 = vmatprep.mubr.f32.mxu0 %v140_v52  ;;  %v990_v7 = vpack.c.bf16 %v99_v5, %v97_v4  ;;  %v98_v9 = vld [vmem:[#allocation2 + $0x150] sm:$0xff]  ;;  %v101_v10 = vld [vmem:[#allocation2 + $0x168] sm:$0xff]  ;;  %v103_v11 = vld [vmem:[#allocation2 + $0x178] sm:$0xff] }
  0x22   :  { %965 = vmatpush1.bf16.msra.mxu0 %v964_v28  ;;  %v992_v12 = vpack.c.bf16 %v98_v9, %v96_v8  ;;  %v994_v13 = vpack.c.bf16 %v103_v11, %v101_v10  ;;  %v100_v14 = vld [vmem:[#allocation2 + $0x160] sm:$0xff]  ;;  %v102_v15 = vld [vmem:[#allocation2 + $0x170] sm:$0xff]  ;;  %v105_v16 = vld [vmem:[#allocation2 + $0x188] sm:$0xff] }
  0x23   :  { %967 = vmatprep.subr.bf16.mxu0 %v966_v29  ;;  %v107_v17 = vld [vmem:[#allocation2 + $0x198] sm:$0xff]  ;;  %v996_v18 = vpack.c.bf16 %v102_v15, %v100_v14  ;;  %v104_v20 = vld [vmem:[#allocation2 + $0x180] sm:$0xff]  ;;  %v106_v21 = vld [vmem:[#allocation2 + $0x190] sm:$0xff] }
  0x24   :  { %v998_v19 = vpack.c.bf16 %v107_v17, %v105_v16  ;;  %v109_v22 = vld [vmem:[#allocation2 + $0x1a8] sm:$0xff]  ;;  %v111_v23 = vld [vmem:[#allocation2 + $0x1b8] sm:$0xff]  ;;  %v1000_v24 = vpack.c.bf16 %v106_v21, %v104_v20  ;;  %v108_v27 = vld [vmem:[#allocation2 + $0x1a0] sm:$0xff] }
  0x25   :  { %v1002_v26 = vpack.c.bf16 %v111_v23, %v109_v22  ;;  %v110_v28 = vld [vmem:[#allocation2 + $0x1b0] sm:$0xff]  ;;  %v113_v29 = vld [vmem:[#allocation2 + $0x1c8] sm:$0xff]  ;;  %v115_v30 = vld [vmem:[#allocation2 + $0x1d8] sm:$0xff] }
  0x26   :  { %969 = vmatpush1.bf16.msra.mxu0 %v968_v36  ;;  %v1004_v31 = vpack.c.bf16 %v110_v28, %v108_v27  ;;  %v1006_v32 = vpack.c.bf16 %v115_v30, %v113_v29  ;;  %v112_v33 = vld [vmem:[#allocation2 + $0x1c0] sm:$0xff]  ;;  %v114_v35 = vld [vmem:[#allocation2 + $0x1d0] sm:$0xff]  ;;  %v117_v36 = vld [vmem:[#allocation2 + $0x1e8] sm:$0xff] }
  0x27   :  { %971 = vmatprep.subr.bf16.mxu0 %v970_v37  ;;  %v119_v37 = vld [vmem:[#allocation2 + $0x1f8] sm:$0xff]  ;;  %v1008_v38 = vpack.c.bf16 %v114_v35, %v112_v33  ;;  %v116_v40 = vld [vmem:[#allocation2 + $0x1e0] sm:$0xff]  ;;  %v118_v41 = vld [vmem:[#allocation2 + $0x1f0] sm:$0xff] }
  0x28   :  { %v1010_v39 = vpack.c.bf16 %v119_v37, %v117_v36  ;;  %v120_v46 = vld [vmem:[%s1472_s2] sm:$0x3]  ;;  %v339_v63 = vld [vmem:[#allocation2 + $0x208] sm:$0xff]  ;;  %v340_v3 = vld [vmem:[#allocation2 + $0x210] sm:$0xff] }
  0x29   :  { %v343_v4 = vld [vmem:[#allocation2 + $0x228] sm:$0xff]  ;;  %v345_v5 = vld [vmem:[#allocation2 + $0x238] sm:$0xff]  ;;  %v342_v8 = vld [vmem:[#allocation2 + $0x220] sm:$0xff] }
  0x2a   :  { %973 = vmatpush1.bf16.msra.mxu0 %v972_v43  ;;  %v1012_v43 = vpack.c.bf16 %v118_v41, %v116_v40  ;;  %v344_v9 = vld [vmem:[#allocation2 + $0x230] sm:$0xff]  ;;  %v347_v10 = vld [vmem:[#allocation2 + $0x248] sm:$0xff]  ;;  %v349_v11 = vld [vmem:[#allocation2 + $0x258] sm:$0xff] }
  0x2b   :  { %975 = vmatprep.subr.bf16.mxu0 %v974_v44  ;;  %v1297_v44 = vand.u32 127, %v28_v25  ;;  %v346_v14 = vld [vmem:[#allocation2 + $0x240] sm:$0xff]  ;;  %v348_v15 = vld [vmem:[#allocation2 + $0x250] sm:$0xff]  ;;  %v351_v16 = vld [vmem:[#allocation2 + $0x268] sm:$0xff] }
  0x2c   :  { %v353_v17 = vld [vmem:[#allocation2 + $0x278] sm:$0xff]  ;;  %v350_v20 = vld [vmem:[#allocation2 + $0x260] sm:$0xff]  ;;  %v352_v21 = vld [vmem:[#allocation2 + $0x270] sm:$0xff] }
  0x2d   :  { %v1309_v49 = vadd.s32 128, %v1297_v44  ;;  %vm33_vm0 = vcmp.lt.s32.totalorder %v1297_v44, 64  ;;  %vm37_vm5 = vcmp.ge.s32.totalorder %v1297_v44, 64  ;;  %v355_v22 = vld [vmem:[#allocation2 + $0x288] sm:$0xff]  ;;  %v357_v23 = vld [vmem:[#allocation2 + $0x298] sm:$0xff]  ;;  %v354_v27 = vld [vmem:[#allocation2 + $0x280] sm:$0xff] }
  0x2e   :  { %977 = vmatpush1.bf16.msra.mxu0 %v976_v51  ;;  %v125_v51 = vrot.slane %v120_v46, %v1300_v45  ;;  %v356_v28 = vld [vmem:[#allocation2 + $0x290] sm:$0xff]  ;;  %v359_v29 = vld [vmem:[#allocation2 + $0x2a8] sm:$0xff]  ;;  %v361_v30 = vld [vmem:[#allocation2 + $0x2b8] sm:$0xff] }
  0x2f   :  { %979 = vmatprep.subr.bf16.mxu0 %v978_v53  ;;  %vm50_vm1 = vcmp.ge.s32.totalorder %v1309_v49, 160  ;;  %vm52_vm2 = vcmp.lt.s32.totalorder %v1309_v49, 192  ;;  %vm46_vm4 = vcmp.lt.s32.totalorder %v1309_v49, 160  ;;  %v358_v33 = vld [vmem:[#allocation2 + $0x2a0] sm:$0xff]  ;;  %v360_v35 = vld [vmem:[#allocation2 + $0x2b0] sm:$0xff]  ;;  %v363_v36 = vld [vmem:[#allocation2 + $0x2c8] sm:$0xff] }
  0x30   :  { %vm1325_vm6 = vmand %vm50_vm1, %vm52_vm2  ;;  %v365_v37 = vld [vmem:[#allocation2 + $0x2d8] sm:$0xff]  ;;  %v362_v40 = vld [vmem:[#allocation2 + $0x2c0] sm:$0xff] }
  0x31   :  { %v364_v41 = vld [vmem:[#allocation2 + $0x2d0] sm:$0xff] }
  0x32   :  { %981 = vmatpush1.bf16.msra.mxu0 %v980_v58 }
  0x33   :  { %983 = vmatprep.subr.bf16.mxu0 %v982_v59 }
  0x36   :  { %985 = vmatpush1.bf16.msra.mxu0 %v984_v0  ;;  %v341_v0 = vld [vmem:[#allocation2 + $0x218] sm:$0xff] }
  0x37   :  { %987 = vmatprep.subr.bf16.mxu0 %v986_v1  ;;  %v338_v1 = vld [vmem:[#allocation2 + $0x200] sm:$0xff]  ;;  %v1014_v2 = vpack.c.bf16 %v341_v0, %v339_v63 }
  0x39   :  { %1015 = vmatprep.subr.bf16.mxu1 %v1014_v2  ;;  %v376_v2 = vld [vmem:[#allocation2 + $0x330] sm:$0xff] }
  0x3a   :  { %989 = vmatpush1.bf16.msra.mxu0 %v988_v6  ;;  %v1016_v6 = vpack.c.bf16 %v340_v3, %v338_v1  ;;  %v374_v1 = vld [vmem:[#allocation2 + $0x320] sm:$0xff] }
  0x3b   :  { %991 = vmatprep.subr.bf16.mxu0 %v990_v7  ;;  %v1018_v7 = vpack.c.bf16 %v345_v5, %v343_v4  ;;  %v1052_v3 = vpack.c.bf16 %v376_v2, %v374_v1  ;;  %v396_v1 = vld [vmem:[#allocation2 + $0x3d0] sm:$0xff]  ;;  %v399_v2 = vld [vmem:[#allocation2 + $0x3e8] sm:$0xff] }
  0x3c   :  { %1017 = vmatpush1.bf16.msra.mxu1 %v1016_v6 }
  0x3d   :  { %1019 = vmatprep.subr.bf16.mxu1 %v1018_v7 }
  0x3e   :  { %993 = vmatpush1.bf16.msra.mxu0 %v992_v12  ;;  %v1020_v12 = vpack.c.bf16 %v344_v9, %v342_v8 }
  0x3f   :  { %995 = vmatprep.subr.bf16.mxu0 %v994_v13  ;;  %v1022_v13 = vpack.c.bf16 %v349_v11, %v347_v10 }
  0x40   :  { %1021 = vmatpush1.bf16.msra.mxu1 %v1020_v12 }
  0x41   :  { %1023 = vmatprep.subr.bf16.mxu1 %v1022_v13 }
  0x42   :  { %997 = vmatpush1.bf16.msra.mxu0 %v996_v18  ;;  %v1024_v18 = vpack.c.bf16 %v348_v15, %v346_v14 }
  0x43   :  { %999 = vmatprep.subr.bf16.mxu0 %v998_v19  ;;  %v1026_v19 = vpack.c.bf16 %v353_v17, %v351_v16 }
  0x44   :  { %1025 = vmatpush1.bf16.msra.mxu1 %v1024_v18 }
  0x45   :  { %1027 = vmatprep.subr.bf16.mxu1 %v1026_v19 }
  0x46   :  { %1001 = vmatpush1.bf16.msra.mxu0 %v1000_v24  ;;  %v1028_v24 = vpack.c.bf16 %v352_v21, %v350_v20 }
  0x47   :  { %1003 = vmatprep.subr.bf16.mxu0 %v1002_v26  ;;  %v1030_v26 = vpack.c.bf16 %v357_v23, %v355_v22 }
  0x48   :  { %1029 = vmatpush1.bf16.msra.mxu1 %v1028_v24 }
  0x49   :  { %1031 = vmatprep.subr.bf16.mxu1 %v1030_v26 }
  0x4a   :  { %1005 = vmatpush1.bf16.msra.mxu0 %v1004_v31  ;;  %v1032_v31 = vpack.c.bf16 %v356_v28, %v354_v27 }
  0x4b   :  { %1007 = vmatprep.subr.bf16.mxu0 %v1006_v32  ;;  %v1034_v32 = vpack.c.bf16 %v361_v30, %v359_v29  ;;  %v379_v29 = vld [vmem:[#allocation2 + $0x348] sm:$0xff]  ;;  %v381_v30 = vld [vmem:[#allocation2 + $0x358] sm:$0xff] }
  0x4c   :  { %1033 = vmatpush1.bf16.msra.mxu1 %v1032_v31  ;;  %v1054_v31 = vpack.c.bf16 %v381_v30, %v379_v29 }
  0x4d   :  { %1035 = vmatprep.subr.bf16.mxu1 %v1034_v32  ;;  %v378_v32 = vld [vmem:[#allocation2 + $0x340] sm:$0xff] }
  0x4e   :  { %1009 = vmatpush1.bf16.msra.mxu0 %v1008_v38  ;;  %v1036_v38 = vpack.c.bf16 %v360_v35, %v358_v33  ;;  %v380_v33 = vld [vmem:[#allocation2 + $0x350] sm:$0xff] }
  0x4f   :  { %1011 = vmatprep.subr.bf16.mxu0 %v1010_v39  ;;  %v1038_v39 = vpack.c.bf16 %v365_v37, %v363_v36  ;;  %v1056_v35 = vpack.c.bf16 %v380_v33, %v378_v32  ;;  %v383_v36 = vld [vmem:[#allocation2 + $0x368] sm:$0xff]  ;;  %v385_v37 = vld [vmem:[#allocation2 + $0x378] sm:$0xff]  ;;  %v521_v32 = vld [vmem:[#allocation2 + $0x470] sm:$0xff] }
  0x50   :  { %1037 = vmatpush1.bf16.msra.mxu1 %v1036_v38  ;;  %v1058_v38 = vpack.c.bf16 %v385_v37, %v383_v36  ;;  %v524_v33 = vld [vmem:[#allocation2 + $0x488] sm:$0xff] }
  0x51   :  { %1039 = vmatprep.subr.bf16.mxu1 %v1038_v39  ;;  %v382_v39 = vld [vmem:[#allocation2 + $0x360] sm:$0xff] }
  0x52   :  { %1013 = vmatpush1.bf16.msra.mxu0 %v1012_v43  ;;  %v367_v43 = vld [vmem:[#allocation2 + $0x2e8] sm:$0xff] }
  0x55   :  { %208 = vmatmul.mubr.f32.vlgmr.msra.gmra.mrb[0].mxu0 %v1291_v50  ;;  %v129_v50 = vrot.slane %v120_v46, %v1306_v48  ;;  %v369_v46 = vld [vmem:[#allocation2 + $0x2f8] sm:$0xff] }
 0x128   :  { %v209_v52 = vpop.f32.mrb[0].mxu0 }
 0x129   :  { %v1316_v25 = vadd.f32 %v209_v52, %v125_v51  ;;  %v211_v53 = vpop.f32.mrb[1].mxu0  ;;  %v1040_v51 = vpack.c.bf16 %v364_v41, %v362_v40  ;;  %v366_v52 = vld [vmem:[#allocation2 + $0x2e0] sm:$0xff]  ;;  %v384_v40 = vld [vmem:[#allocation2 + $0x370] sm:$0xff] }
 0x12a   :  { %v1319_v34 = vadd.f32 %v211_v53, %v129_v50  ;;  %v1042_v50 = vpack.c.bf16 %v369_v46, %v367_v43  ;;  %v368_v53 = vld [vmem:[#allocation2 + $0x2f0] sm:$0xff]  ;;  %v1060_v41 = vpack.c.bf16 %v384_v40, %v382_v39  ;;  %v387_v43 = vld [vmem:[#allocation2 + $0x388] sm:$0xff]  ;;  %v389_v46 = vld [vmem:[#allocation2 + $0x398] sm:$0xff] }
 0x12b   :  { %v218_v54 = vsel %vm33_vm0, %v1316_v25, 0.0  ;;  %v235_v59 = vsel %vm37_vm5, %v1316_v25, 0.0  ;;  %1041 = vmatpush1.bf16.msra.mxu1 %v1040_v51  ;;  %v1062_v51 = vpack.c.bf16 %v389_v46, %v387_v43  ;;  %v525_v39 = vld [vmem:[#allocation2 + $0x490] sm:$0xff]  ;;  %v528_v40 = vld [vmem:[#allocation2 + $0x4a8] sm:$0xff] }
 0x12c   :  { %v221_v56 = vsel %vm220_vm3, %v218_v54, 0.0  ;;  %v252_v57 = vsel %vm46_vm4, %v1319_v34, 0.0  ;;  %v268_v60 = vsel %vm1325_vm6, %v1319_v34, 0.0  ;;  %v237_v61 = vsel %vm220_vm3, %v235_v59, 0.0  ;;  %v371_v54 = vld [vmem:[#allocation2 + $0x308] sm:$0xff]  ;;  %1043 = vmatprep.subr.bf16.mxu1 %v1042_v50  ;;  %v370_v59 = vld [vmem:[#allocation2 + $0x300] sm:$0xff] }
 0x12d   :  { %224 = vadd.xlane.f32.xlu1 %v221_v56  ;;  %v254_v58 = vsel %vm220_vm3, %v252_v57, 0.0  ;;  %v270_v62 = vsel %vm220_vm3, %v268_v60, 0.0  ;;  %v373_v56 = vld [vmem:[#allocation2 + $0x318] sm:$0xff]  ;;  %v1044_v57 = vpack.c.bf16 %v368_v53, %v366_v52  ;;  %v372_v60 = vld [vmem:[#allocation2 + $0x310] sm:$0xff]  ;;  %v386_v50 = vld [vmem:[#allocation2 + $0x380] sm:$0xff] }
 0x12e   :  { %256 = vadd.xlane.f32.xlu0 %v254_v58  ;;  %v1046_v58 = vpack.c.bf16 %v373_v56, %v371_v54  ;;  %v1048_v63 = vpack.c.bf16 %v372_v60, %v370_v59  ;;  %v388_v52 = vld [vmem:[#allocation2 + $0x390] sm:$0xff]  ;;  %v391_v54 = vld [vmem:[#allocation2 + $0x3a8] sm:$0xff]  ;;  %v393_v56 = vld [vmem:[#allocation2 + $0x3b8] sm:$0xff] }
 0x12f   :  { %1045 = vmatpush1.bf16.msra.mxu1 %v1044_v57  ;;  %v1064_v53 = vpack.c.bf16 %v388_v52, %v386_v50  ;;  %v1066_v57 = vpack.c.bf16 %v393_v56, %v391_v54  ;;  %v392_v59 = vld [vmem:[#allocation2 + $0x3b0] sm:$0xff]  ;;  %v532_v52 = vld [vmem:[#allocation2 + $0x4c8] sm:$0xff] }
 0x130   :  { %1047 = vmatprep.subr.bf16.mxu1 %v1046_v58  ;;  %v390_v58 = vld [vmem:[#allocation2 + $0x3a0] sm:$0xff]  ;;  %v529_v50 = vld [vmem:[#allocation2 + $0x4b0] sm:$0xff] }
 0x131   :  { %240 = vadd.xlane.f32.xlu1 %v237_v61  ;;  %v375_v61 = vld [vmem:[#allocation2 + $0x328] sm:$0xff]  ;;  %v1068_v60 = vpack.c.bf16 %v392_v59, %v390_v58  ;;  %v533_v58 = vld [vmem:[#allocation2 + $0x4d0] sm:$0xff] }
 0x132   :  { %272 = vadd.xlane.f32.xlu0 %v270_v62  ;;  %v377_v62 = vld [vmem:[#allocation2 + $0x338] sm:$0xff]  ;;  %v536_v59 = vld [vmem:[#allocation2 + $0x4e8] sm:$0xff] }
 0x133   :  { %v1050_v0 = vpack.c.bf16 %v377_v62, %v375_v61  ;;  %1049 = vmatpush1.bf16.msra.mxu1 %v1048_v63  ;;  %v395_v61 = vld [vmem:[#allocation2 + $0x3c8] sm:$0xff]  ;;  %v397_v62 = vld [vmem:[#allocation2 + $0x3d8] sm:$0xff]  ;;  %v394_v63 = vld [vmem:[#allocation2 + $0x3c0] sm:$0xff] }
 0x135   :  { %1051 = vmatprep.subr.bf16.mxu1 %v1050_v0  ;;  %v1070_v0 = vpack.c.bf16 %v397_v62, %v395_v61 }
 0x137   :  { %1053 = vmatpush1.bf16.msra.mxu1 %v1052_v3  ;;  %v401_v3 = vld [vmem:[#allocation2 + $0x3f8] sm:$0xff] }
 0x138   :  { %1055 = vmatprep.subr.bf16.mxu1 %v1054_v31  ;;  %v519_v31 = vld [vmem:[#allocation2 + $0x460] sm:$0xff] }
 0x139   :  { %v1092_v36 = vpack.c.bf16 %v521_v32, %v519_v31 }
 0x13b   :  { %1057 = vmatpush1.bf16.msra.mxu1 %v1056_v35  ;;  %v526_v35 = vld [vmem:[#allocation2 + $0x498] sm:$0xff] }
 0x13c   :  { %1059 = vmatprep.subr.bf16.mxu1 %v1058_v38  ;;  %v1094_v37 = vpack.c.bf16 %v526_v35, %v524_v33  ;;  %v523_v38 = vld [vmem:[#allocation2 + $0x480] sm:$0xff] }
 0x13d   :  { %v1096_v43 = vpack.c.bf16 %v525_v39, %v523_v38 }
 0x13f   :  { %1061 = vmatpush1.bf16.msra.mxu1 %v1060_v41  ;;  %v530_v41 = vld [vmem:[#allocation2 + $0x4b8] sm:$0xff] }
 0x140   :  { %1063 = vmatprep.subr.bf16.mxu1 %v1062_v51  ;;  %v1098_v46 = vpack.c.bf16 %v530_v41, %v528_v40  ;;  %v527_v51 = vld [vmem:[#allocation2 + $0x4a0] sm:$0xff] }
 0x141   :  { %v1100_v54 = vpack.c.bf16 %v529_v50, %v527_v51 }
 0x143   :  { %1065 = vmatpush1.bf16.msra.mxu1 %v1064_v53  ;;  %v534_v53 = vld [vmem:[#allocation2 + $0x4d8] sm:$0xff] }
 0x144   :  { %1067 = vmatprep.subr.bf16.mxu1 %v1066_v57  ;;  %v1102_v56 = vpack.c.bf16 %v534_v53, %v532_v52  ;;  %v531_v57 = vld [vmem:[#allocation2 + $0x4c0] sm:$0xff] }
 0x145   :  { %v1104_v61 = vpack.c.bf16 %v533_v58, %v531_v57  ;;  %v555_v58 = vld [vmem:[#allocation2 + $0x580] sm:$0xff] }
 0x147   :  { %1069 = vmatpush1.bf16.msra.mxu1 %v1068_v60  ;;  %v538_v60 = vld [vmem:[#allocation2 + $0x4f8] sm:$0xff] }
 0x148   :  { %1071 = vmatprep.subr.bf16.mxu1 %v1070_v0  ;;  %v1106_v62 = vpack.c.bf16 %v538_v60, %v536_v59  ;;  %v537_v0 = vld [vmem:[#allocation2 + $0x4f0] sm:$0xff] }
 0x149   :  { %v557_v59 = vld [vmem:[#allocation2 + $0x590] sm:$0xff] }
 0x14a   :  { %v1128_v60 = vpack.c.bf16 %v557_v59, %v555_v58  ;;  %v777_v58 = vld [vmem:[#allocation2 + $0x620] sm:$0xff]  ;;  %v779_v59 = vld [vmem:[#allocation2 + $0x630] sm:$0xff] }
 0x1ba   :  { %v225_v4 = vpop.xlane.xlu1 %224 }
 0x1bb   :  { %v257_v5 = vpop.xlane.xlu0 %256  ;;  %v226_v6 = vmul.f32 0.015625, %v225_v4  ;;  %v1072_v4 = vpack.c.bf16 %v396_v1, %v394_v63  ;;  %v535_v63 = vld [vmem:[#allocation2 + $0x4e0] sm:$0xff]  ;;  %v540_v1 = vld [vmem:[#allocation2 + $0x508] sm:$0xff] }
 0x1bc   :  { %v258_v7 = vmul.f32 0.03125, %v257_v5  ;;  %v1074_v5 = vpack.c.bf16 %v401_v3, %v399_v2  ;;  %v542_v2 = vld [vmem:[#allocation2 + $0x518] sm:$0xff]  ;;  %v1108_v3 = vpack.c.bf16 %v537_v0, %v535_v63  ;;  %v559_v0 = vld [vmem:[#allocation2 + $0x5a0] sm:$0xff] }
 0x1bd   :  { %v227_v12 = vsel %vm33_vm0, %v226_v6, 0.0  ;;  %1073 = vmatpush1.bf16.msra.mxu1 %v1072_v4  ;;  %v398_v6 = vld [vmem:[#allocation2 + $0x3e0] sm:$0xff]  ;;  %v1110_v4 = vpack.c.bf16 %v542_v2, %v540_v1  ;;  %v561_v1 = vld [vmem:[#allocation2 + $0x5b0] sm:$0xff] }
 0x1be   :  { %v241_v8 = vpop.xlane.xlu1 %240  ;;  %v260_v14 = vsel %vm46_vm4, %v258_v7, 0.0  ;;  %1075 = vmatprep.subr.bf16.mxu1 %v1074_v5  ;;  %v400_v7 = vld [vmem:[#allocation2 + $0x3f0] sm:$0xff]  ;;  %v539_v5 = vld [vmem:[#allocation2 + $0x500] sm:$0xff]  ;;  %v1132_v2 = vpack.c.bf16 %v561_v1, %v559_v0 }
 0x1bf   :  { %v242_v9 = vmul.f32 0.015625, %v241_v8  ;;  %v273_v10 = vpop.xlane.xlu0 %272  ;;  %v1076_v8 = vpack.c.bf16 %v400_v7, %v398_v6  ;;  %v541_v6 = vld [vmem:[#allocation2 + $0x510] sm:$0xff]  ;;  %v544_v7 = vld [vmem:[#allocation2 + $0x528] sm:$0xff]  ;;  %v781_v0 = vld [vmem:[#allocation2 + $0x640] sm:$0xff] }
 0x1c0   :  { %v274_v11 = vmul.f32 0.03125, %v273_v10  ;;  %v510_v10 = vld [vmem:[#allocation2 + $0x418] sm:$0xff]  ;;  %v783_v1 = vld [vmem:[#allocation2 + $0x650] sm:$0xff] }
 0x1c1   :  { %v243_v13 = vsel %vm37_vm5, %v242_v9, 0.0  ;;  %1077 = vmatpush1.bf16.msra.mxu1 %v1076_v8  ;;  %v508_v9 = vld [vmem:[#allocation2 + $0x408] sm:$0xff]  ;;  %v546_v8 = vld [vmem:[#allocation2 + $0x538] sm:$0xff] }
 0x1c2   :  { %v245_v15 = vadd.f32 %v243_v13, %v227_v12  ;;  %v276_v16 = vsel %vm1325_vm6, %v274_v11, 0.0  ;;  %v507_v11 = vld [vmem:[#allocation2 + $0x400] sm:$0xff]  ;;  %v1078_v12 = vpack.c.bf16 %v510_v10, %v508_v9  ;;  %v509_v13 = vld [vmem:[#allocation2 + $0x410] sm:$0xff]  ;;  %v1112_v9 = vpack.c.bf16 %v541_v6, %v539_v5 }
 0x1c3   :  { %v278_v17 = vadd.f32 %v276_v16, %v260_v14  ;;  %v512_v14 = vld [vmem:[#allocation2 + $0x428] sm:$0xff]  ;;  %v1080_v16 = vpack.c.bf16 %v509_v13, %v507_v11  ;;  %v1114_v10 = vpack.c.bf16 %v546_v8, %v544_v7  ;;  %v543_v11 = vld [vmem:[#allocation2 + $0x520] sm:$0xff]  ;;  %v565_v6 = vld [vmem:[#allocation2 + $0x5d0] sm:$0xff] }
 0x1c4   :  { %v1351_v18 = vsub.f32 %v1316_v25, %v245_v15  ;;  %v514_v15 = vld [vmem:[#allocation2 + $0x438] sm:$0xff]  ;;  %1079 = vmatprep.subr.bf16.mxu0 %v1078_v12  ;;  %v545_v12 = vld [vmem:[#allocation2 + $0x530] sm:$0xff]  ;;  %v548_v13 = vld [vmem:[#allocation2 + $0x548] sm:$0xff] }
 0x1c5   :  { %v1354_v19 = vsub.f32 %v1319_v34, %v278_v17  ;;  %v1082_v17 = vpack.c.bf16 %v514_v15, %v512_v14  ;;  %1081 = vmatpush1.bf16.msra.mxu0 %v1080_v16  ;;  %v550_v14 = vld [vmem:[#allocation2 + $0x558] sm:$0xff]  ;;  %v1116_v15 = vpack.c.bf16 %v545_v12, %v543_v11  ;;  %v563_v5 = vld [vmem:[#allocation2 + $0x5c0] sm:$0xff]  ;;  %v569_v11 = vld [vmem:[#allocation2 + $0x5f0] sm:$0xff] }
 0x1c6   :  { %v281_v21 = vmul.f32 %v1351_v18, %v1351_v18  ;;  %v1118_v16 = vpack.c.bf16 %v550_v14, %v548_v13  ;;  %v1136_v7 = vpack.c.bf16 %v565_v6, %v563_v5  ;;  %v570_v8 = vld [vmem:[#allocation2 + $0x5f8] sm:$0xff]  ;;  %v947_v13 = vld [vmem:[%s1472_s2 + $0x2] sm:$0x3]  ;;  %v787_v6 = vld [vmem:[#allocation2 + $0x670] sm:$0xff] }
 0x1c7   :  { %v282_v20 = vmul.f32 %v1354_v19, %v1354_v19  ;;  %1083 = vmatprep.subr.bf16.mxu0 %v1082_v17  ;;  %v547_v17 = vld [vmem:[#allocation2 + $0x540] sm:$0xff]  ;;  %v491_v14 = vrot.slane %v947_v13, %v1300_v45 }
 0x1c8   :  { %v295_v34 = vsel %vm37_vm5, %v281_v21, 0.0  ;;  %v283_v26 = vsel %vm33_vm0, %v281_v21, 0.0  ;;  %v513_v21 = vld [vmem:[#allocation2 + $0x430] sm:$0xff]  ;;  %v785_v5 = vld [vmem:[#allocation2 + $0x660] sm:$0xff] }
 0x1c9   :  { %v308_v22 = vsel %vm46_vm4, %v282_v20, 0.0  ;;  %v320_v23 = vsel %vm1325_vm6, %v282_v20, 0.0  ;;  %v297_v27 = vsel %vm220_vm3, %v295_v34, 0.0  ;;  %v285_v28 = vsel %vm220_vm3, %v283_v26, 0.0  ;;  %v511_v20 = vld [vmem:[#allocation2 + $0x420] sm:$0xff]  ;;  %v517_v26 = vld [vmem:[#allocation2 + $0x450] sm:$0xff] }
 0x1ca   :  { %v310_v24 = vsel %vm220_vm3, %v308_v22, 0.0  ;;  %v322_v25 = vsel %vm220_vm3, %v320_v23, 0.0  ;;  %v516_v22 = vld [vmem:[#allocation2 + $0x448] sm:$0xff]  ;;  %v518_v23 = vld [vmem:[#allocation2 + $0x458] sm:$0xff]  ;;  %v515_v34 = vld [vmem:[#allocation2 + $0x440] sm:$0xff] }
 0x1cb   :  { %312 = vadd.xlane.f32.xlu0 %v310_v24  ;;  %324 = vadd.xlane.f32.xlu1 %v322_v25  ;;  %v1084_v24 = vpack.c.bf16 %v513_v21, %v511_v20  ;;  %v1086_v25 = vpack.c.bf16 %v518_v23, %v516_v22  ;;  %v1088_v29 = vpack.c.bf16 %v517_v26, %v515_v34  ;;  %v549_v20 = vld [vmem:[#allocation2 + $0x550] sm:$0xff]  ;;  %v552_v21 = vld [vmem:[#allocation2 + $0x568] sm:$0xff]  ;;  %v554_v22 = vld [vmem:[#allocation2 + $0x578] sm:$0xff] }
 0x1cc   :  { %v1120_v23 = vpack.c.bf16 %v549_v20, %v547_v17  ;;  %v553_v34 = vld [vmem:[#allocation2 + $0x570] sm:$0xff]  ;;  %v556_v26 = vld [vmem:[#allocation2 + $0x588] sm:$0xff] }
 0x1cd   :  { %1085 = vmatpush1.bf16.msra.mxu0 %v1084_v24  ;;  %v1122_v24 = vpack.c.bf16 %v554_v22, %v552_v21 }
 0x1ce   :  { %1087 = vmatprep.subr.bf16.mxu0 %v1086_v25  ;;  %v551_v25 = vld [vmem:[#allocation2 + $0x560] sm:$0xff] }
 0x1cf   :  { %300 = vadd.xlane.f32.xlu1 %v297_v27  ;;  %288 = vadd.xlane.f32.xlu0 %v285_v28  ;;  %v520_v27 = vld [vmem:[#allocation2 + $0x468] sm:$0xff]  ;;  %v522_v28 = vld [vmem:[#allocation2 + $0x478] sm:$0xff] }
 0x1d0   :  { %v1090_v30 = vpack.c.bf16 %v522_v28, %v520_v27  ;;  %v558_v27 = vld [vmem:[#allocation2 + $0x598] sm:$0xff]  ;;  %v1124_v28 = vpack.c.bf16 %v553_v34, %v551_v25 }
 0x1d1   :  { %1089 = vmatpush1.bf16.msra.mxu0 %v1088_v29  ;;  %v1126_v29 = vpack.c.bf16 %v558_v27, %v556_v26  ;;  %v948_v27 = vld [vmem:[%s1472_s2 + $0x4] sm:$0x3] }
 0x1d2   :  { %1091 = vmatprep.subr.bf16.mxu0 %v1090_v30 }
 0x1d5   :  { %1093 = vmatpush1.bf16.msra.mxu0 %v1092_v36 }
 0x1d6   :  { %1095 = vmatprep.subr.bf16.mxu0 %v1094_v37 }
 0x1d9   :  { %1097 = vmatpush1.bf16.msra.mxu0 %v1096_v43 }
 0x1da   :  { %1099 = vmatprep.subr.bf16.mxu0 %v1098_v46 }
 0x1dd   :  { %1101 = vmatpush1.bf16.msra.mxu0 %v1100_v54 }
 0x1de   :  { %1103 = vmatprep.subr.bf16.mxu0 %v1102_v56 }
 0x1e1   :  { %1105 = vmatpush1.bf16.msra.mxu0 %v1104_v61  ;;  %v560_v61 = vld [vmem:[#allocation2 + $0x5a8] sm:$0xff] }
 0x1e2   :  { %1107 = vmatprep.subr.bf16.mxu0 %v1106_v62  ;;  %v562_v62 = vld [vmem:[#allocation2 + $0x5b8] sm:$0xff] }
 0x1e3   :  { %v1130_v63 = vpack.c.bf16 %v562_v62, %v560_v61  ;;  %v784_v61 = vld [vmem:[#allocation2 + $0x658] sm:$0xff]  ;;  %v1148_v62 = vpack.c.bf16 %v779_v59, %v777_v58 }
 0x1e5   :  { %1109 = vmatpush1.bf16.msra.mxu0 %v1108_v3  ;;  %v564_v3 = vld [vmem:[#allocation2 + $0x5c8] sm:$0xff] }
 0x1e6   :  { %1111 = vmatprep.subr.bf16.mxu0 %v1110_v4  ;;  %v566_v4 = vld [vmem:[#allocation2 + $0x5d8] sm:$0xff] }
 0x1e9   :  { %1113 = vmatpush1.bf16.msra.mxu0 %v1112_v9  ;;  %v567_v9 = vld [vmem:[#allocation2 + $0x5e0] sm:$0xff] }
 0x1ea   :  { %1115 = vmatprep.subr.bf16.mxu0 %v1114_v10  ;;  %v1140_v12 = vpack.c.bf16 %v569_v11, %v567_v9  ;;  %v791_v11 = vld [vmem:[#allocation2 + $0x690] sm:$0xff] }
 0x1ed   :  { %1117 = vmatpush1.bf16.msra.mxu0 %v1116_v15  ;;  %v495_v15 = vrot.slane %v947_v13, %v1306_v48  ;;  %v796_v13 = vld [vmem:[#allocation2 + $0x6b8] sm:$0xff] }
 0x1ee   :  { %1119 = vmatprep.subr.bf16.mxu0 %v1118_v16 }
 0x1ef   :  { %v496_v17 = vcombine.low %v491_v14, %v495_v15 }
 0x1f1   :  { %1121 = vmatpush1.bf16.msra.mxu0 %v1120_v23  ;;  %v503_v23 = vrot.slane %v496_v17, %v1282_v42  ;;  %v795_v17 = vld [vmem:[#allocation2 + $0x6b0] sm:$0xff] }
 0x1f2   :  { %1123 = vmatprep.subr.bf16.mxu0 %v1122_v24 }
 0x1f5   :  { %1125 = vmatpush1.bf16.msra.mxu0 %v1124_v28  ;;  %v577_v28 = vrot.slane %v948_v27, %v1300_v45 }
 0x1f6   :  { %1127 = vmatprep.subr.bf16.mxu0 %v1126_v29  ;;  %v581_v29 = vrot.slane %v948_v27, %v1306_v48  ;;  %v804_v27 = vld [vmem:[#allocation2 + $0x6f8] sm:$0xff] }
 0x1f9   :  { %1129 = vmatpush1.bf16.msra.mxu0 %v1128_v60  ;;  %v782_v60 = vld [vmem:[#allocation2 + $0x648] sm:$0xff] }
 0x1fa   :  { %1131 = vmatprep.subr.bf16.mxu0 %v1130_v63  ;;  %v1150_v63 = vpack.c.bf16 %v784_v61, %v782_v60 }
 0x1fd   :  { %1133 = vmatpush1.bf16.msra.mxu0 %v1132_v2  ;;  %v786_v2 = vld [vmem:[#allocation2 + $0x668] sm:$0xff] }
 0x258   :  { %v313_v30 = vpop.xlane.xlu0 %312  ;;  %v325_v31 = vpop.xlane.xlu1 %324 }
 0x259   :  { %v314_v32 = vmul.f32 0.03125, %v313_v30  ;;  %v326_v33 = vmul.f32 0.03125, %v325_v31 }
 0x25b   :  { %v316_v35 = vsel %vm46_vm4, %v314_v32, 0.0  ;;  %v328_v36 = vsel %vm1325_vm6, %v326_v33, 0.0 }
 0x25c   :  { %v330_v37 = vadd.f32 %v328_v36, %v316_v35  ;;  %v289_v38 = vpop.xlane.xlu0 %288  ;;  %v301_v39 = vpop.xlane.xlu1 %300 }
 0x25d   :  { %v290_v40 = vmul.f32 0.015625, %v289_v38  ;;  %v302_v41 = vmul.f32 0.015625, %v301_v39 }
 0x25e   :  { %v332_v43 = vadd.f32 1e-05, %v330_v37 }
 0x25f   :  { %v291_v46 = vsel %vm33_vm0, %v290_v40, 0.0  ;;  %v303_v51 = vsel %vm37_vm5, %v302_v41, 0.0 }
 0x260   :  { %1210 = vrsqrt.f32 %v332_v43  ;;  %v305_v50 = vadd.f32 %v303_v51, %v291_v46  ;;  %v774_v43 = vld [vmem:[#allocation2 + $0x608] sm:$0xff]  ;;  %v776_v46 = vld [vmem:[#allocation2 + $0x618] sm:$0xff]  ;;  %v773_v51 = vld [vmem:[#allocation2 + $0x600] sm:$0xff] }
 0x262   :  { %v331_v52 = vadd.f32 1e-05, %v305_v50  ;;  %v1142_v50 = vpack.c.bf16 %v776_v46, %v774_v43 }
 0x264   :  { %1212 = vrsqrt.f32 %v331_v52  ;;  %v775_v52 = vld [vmem:[#allocation2 + $0x610] sm:$0xff]  ;;  %1143 = vmatprep.subr.bf16.mxu1 %v1142_v50 }
 0x265   :  { %v811_v50 = vld [vmem:[#allocation2 + $0x730] sm:$0xff] }
 0x26a   :  { %v1211_v53 = vpop.eup %1210 }
 0x26b   :  { %v336_v54 = vmul.f32 %v1211_v53, %v1354_v19  ;;  %v1134_v19 = vpack.c.bf16 %v566_v4, %v564_v3  ;;  %v778_v53 = vld [vmem:[#allocation2 + $0x628] sm:$0xff]  ;;  %v788_v3 = vld [vmem:[#allocation2 + $0x678] sm:$0xff]  ;;  %v1152_v4 = vpack.c.bf16 %v783_v1, %v781_v0 }
 0x26d   :  { %466 = vmatprep.mubr.f32.mxu1 %v336_v54  ;;  %1135 = vmatprep.subr.bf16.mxu0 %v1134_v19  ;;  %v780_v54 = vld [vmem:[#allocation2 + $0x638] sm:$0xff]  ;;  %v1154_v19 = vpack.c.bf16 %v788_v3, %v786_v2 }
 0x26e   :  { %v1213_v56 = vpop.eup %1212  ;;  %1137 = vmatpush1.bf16.msra.mxu0 %v1136_v7  ;;  %v790_v7 = vld [vmem:[#allocation2 + $0x688] sm:$0xff] }
 0x26f   :  { %v335_v57 = vmul.f32 %v1213_v56, %v1351_v18  ;;  %v568_v18 = vld [vmem:[#allocation2 + $0x5e8] sm:$0xff]  ;;  %v1144_v56 = vpack.c.bf16 %v775_v52, %v773_v51  ;;  %v809_v51 = vld [vmem:[#allocation2 + $0x720] sm:$0xff] }
 0x270   :  { %v1138_v10 = vpack.c.bf16 %v570_v8, %v568_v18  ;;  %v792_v18 = vld [vmem:[#allocation2 + $0x698] sm:$0xff]  ;;  %v1156_v8 = vpack.c.bf16 %v787_v6, %v785_v5  ;;  %v1180_v52 = vpack.c.bf16 %v811_v50, %v809_v51  ;;  %v831_v51 = vld [vmem:[#allocation2 + $0x7d0] sm:$0xff]  ;;  %v834_v50 = vld [vmem:[#allocation2 + $0x7e8] sm:$0xff] }
 0x271   :  { %467 = vmatmul.mubr.f32.vlgmr.msra.gmra.mrb[0].mxu1 %v335_v57  ;;  %v1146_v57 = vpack.c.bf16 %v780_v54, %v778_v53  ;;  %v1158_v9 = vpack.c.bf16 %v792_v18, %v790_v7 }
 0x272   :  { %1139 = vmatprep.subr.bf16.mxu0 %v1138_v10  ;;  %1145 = vmatpush1.bf16.msra.mxu1 %v1144_v56  ;;  %v789_v10 = vld [vmem:[#allocation2 + $0x680] sm:$0xff] }
 0x273   :  { %1141 = vmatpush1.bf16.msra.mxu0 %v1140_v12  ;;  %1147 = vmatprep.subr.bf16.mxu1 %v1146_v57  ;;  %v794_v12 = vld [vmem:[#allocation2 + $0x6a8] sm:$0xff]  ;;  %v1160_v14 = vpack.c.bf16 %v791_v11, %v789_v10 }
 0x274   :  { %v1162_v15 = vpack.c.bf16 %v796_v13, %v794_v12  ;;  %v814_v12 = vld [vmem:[#allocation2 + $0x748] sm:$0xff]  ;;  %v816_v13 = vld [vmem:[#allocation2 + $0x758] sm:$0xff] }
 0x276   :  { %1149 = vmatpush1.bf16.msra.mxu1 %v1148_v62 }
 0x277   :  { %1151 = vmatprep.subr.bf16.mxu1 %v1150_v63 }
 0x27a   :  { %1153 = vmatpush1.bf16.msra.mxu1 %v1152_v4 }
 0x27b   :  { %1155 = vmatprep.subr.bf16.mxu1 %v1154_v19 }
 0x27e   :  { %1157 = vmatpush1.bf16.msra.mxu1 %v1156_v8 }
 0x27f   :  { %1159 = vmatprep.subr.bf16.mxu1 %v1158_v9 }
 0x282   :  { %1161 = vmatpush1.bf16.msra.mxu1 %v1160_v14  ;;  %v1182_v14 = vpack.c.bf16 %v816_v13, %v814_v12 }
 0x283   :  { %1163 = vmatprep.subr.bf16.mxu1 %v1162_v15  ;;  %v813_v15 = vld [vmem:[#allocation2 + $0x740] sm:$0xff] }
 0x344   :  { %v468_v16 = vpop.f32.mrb[0].mxu1 }
 0x345   :  { %v470_v20 = vpop.f32.mrb[1].mxu1 }
 0x346   :  { %v475_v21 = vcombine.low %v468_v16, %v470_v20  ;;  %v793_v16 = vld [vmem:[#allocation2 + $0x6a0] sm:$0xff]  ;;  %v798_v20 = vld [vmem:[#allocation2 + $0x6c8] sm:$0xff] }
 0x348   :  { %v482_v22 = vrot.slane %v475_v21, %v1282_v42  ;;  %v800_v21 = vld [vmem:[#allocation2 + $0x6d8] sm:$0xff] }
 0x34a   :  { %v484_v24 = vadd.f32 %v482_v22, %v1287_v47  ;;  %v1164_v22 = vpack.c.bf16 %v795_v17, %v793_v16  ;;  %v815_v16 = vld [vmem:[#allocation2 + $0x750] sm:$0xff] }
 0x34b   :  { %v1184_v17 = vpack.c.bf16 %v815_v16, %v813_v15 }
 0x34c   :  { %v1390_v25 = vadd.f32 %v503_v23, %v484_v24  ;;  %v1166_v23 = vpack.c.bf16 %v800_v21, %v798_v20  ;;  %v797_v24 = vld [vmem:[#allocation2 + $0x6c0] sm:$0xff]  ;;  %1165 = vmatpush1.bf16.msra.mxu1 %v1164_v22  ;;  %v818_v20 = vld [vmem:[#allocation2 + $0x768] sm:$0xff]  ;;  %v820_v21 = vld [vmem:[#allocation2 + $0x778] sm:$0xff] }
 0x34d   :  { %v1186_v22 = vpack.c.bf16 %v820_v21, %v818_v20 }
 0x34e   :  { %v591_v34 = vrot.slane %v1390_v25, %v1282_v42  ;;  %1167 = vmatprep.subr.bf16.mxu1 %v1166_v23  ;;  %v817_v23 = vld [vmem:[#allocation2 + $0x760] sm:$0xff] }
 0x350   :  { %v592_v26 = vcombine.high %v591_v34, %v591_v34 }
 0x352   :  { %659 = vmatprep.mubr.f32.mxu0 %v592_v26  ;;  %v802_v26 = vld [vmem:[#allocation2 + $0x6e8] sm:$0xff] }
 0x353   :  { %660 = vmatmul.mubr.f32.vlgmr.msra.gmra.mrb[2].mxu0 %v591_v34  ;;  %v799_v34 = vld [vmem:[#allocation2 + $0x6d0] sm:$0xff] }
 0x426   :  { %v661_v30 = vpop.f32.mrb[2].mxu0 }
 0x427   :  { %v663_v31 = vpop.f32.mrb[3].mxu0  ;;  %v1399_v32 = vadd.f32 %v661_v30, %v577_v28  ;;  %v1168_v28 = vpack.c.bf16 %v799_v34, %v797_v24  ;;  %v801_v30 = vld [vmem:[#allocation2 + $0x6e0] sm:$0xff]  ;;  %v819_v24 = vld [vmem:[#allocation2 + $0x770] sm:$0xff] }
 0x428   :  { %v1401_v47 = vadd.f32 %v663_v31, %v581_v29  ;;  %v1170_v29 = vpack.c.bf16 %v804_v27, %v802_v26  ;;  %v803_v31 = vld [vmem:[#allocation2 + $0x6f0] sm:$0xff]  ;;  %v1188_v34 = vpack.c.bf16 %v819_v24, %v817_v23  ;;  %v822_v26 = vld [vmem:[#allocation2 + $0x788] sm:$0xff]  ;;  %v824_v27 = vld [vmem:[#allocation2 + $0x798] sm:$0xff] }
 0x429   :  { %v678_v38 = vsel %vm37_vm5, %v1399_v32, 0.0  ;;  %v666_v39 = vsel %vm33_vm0, %v1399_v32, 0.0  ;;  %1169 = vmatpush1.bf16.msra.mxu1 %v1168_v28  ;;  %v1190_v28 = vpack.c.bf16 %v824_v27, %v822_v26 }
 0x42a   :  { %v703_v33 = vsel %vm1325_vm6, %v1401_v47, 0.0  ;;  %v691_v35 = vsel %vm46_vm4, %v1401_v47, 0.0  ;;  %v680_v40 = vsel %vm220_vm3, %v678_v38, 0.0  ;;  %v668_v41 = vsel %vm220_vm3, %v666_v39, 0.0  ;;  %1171 = vmatprep.subr.bf16.mxu1 %v1170_v29  ;;  %v805_v38 = vld [vmem:[#allocation2 + $0x700] sm:$0xff]  ;;  %v807_v39 = vld [vmem:[#allocation2 + $0x710] sm:$0xff] }
 0x42b   :  { %v705_v36 = vsel %vm220_vm3, %v703_v33, 0.0  ;;  %v693_v37 = vsel %vm220_vm3, %v691_v35, 0.0  ;;  %v806_v33 = vld [vmem:[#allocation2 + $0x708] sm:$0xff]  ;;  %v808_v35 = vld [vmem:[#allocation2 + $0x718] sm:$0xff]  ;;  %v1176_v43 = vpack.c.bf16 %v807_v39, %v805_v38  ;;  %v821_v29 = vld [vmem:[#allocation2 + $0x780] sm:$0xff] }
 0x42c   :  { %707 = vadd.xlane.f32.xlu1 %v705_v36  ;;  %695 = vadd.xlane.f32.xlu0 %v693_v37  ;;  %v1172_v36 = vpack.c.bf16 %v803_v31, %v801_v30  ;;  %v1174_v37 = vpack.c.bf16 %v808_v35, %v806_v33  ;;  %v823_v30 = vld [vmem:[#allocation2 + $0x790] sm:$0xff]  ;;  %v826_v33 = vld [vmem:[#allocation2 + $0x7a8] sm:$0xff]  ;;  %v828_v35 = vld [vmem:[#allocation2 + $0x7b8] sm:$0xff] }
 0x42d   :  { %v1192_v31 = vpack.c.bf16 %v823_v30, %v821_v29  ;;  %v827_v38 = vld [vmem:[#allocation2 + $0x7b0] sm:$0xff] }
 0x42e   :  { %1173 = vmatpush1.bf16.msra.mxu1 %v1172_v36  ;;  %v1194_v36 = vpack.c.bf16 %v828_v35, %v826_v33 }
 0x42f   :  { %1175 = vmatprep.subr.bf16.mxu1 %v1174_v37  ;;  %v825_v37 = vld [vmem:[#allocation2 + $0x7a0] sm:$0xff] }
 0x430   :  { %683 = vadd.xlane.f32.xlu1 %v680_v40  ;;  %671 = vadd.xlane.f32.xlu0 %v668_v41  ;;  %v810_v40 = vld [vmem:[#allocation2 + $0x728] sm:$0xff]  ;;  %v812_v41 = vld [vmem:[#allocation2 + $0x738] sm:$0xff]  ;;  %v1196_v39 = vpack.c.bf16 %v827_v38, %v825_v37 }
 0x431   :  { %v1178_v46 = vpack.c.bf16 %v812_v41, %v810_v40  ;;  %v830_v40 = vld [vmem:[#allocation2 + $0x7c8] sm:$0xff]  ;;  %v832_v41 = vld [vmem:[#allocation2 + $0x7d8] sm:$0xff] }
 0x432   :  { %1177 = vmatpush1.bf16.msra.mxu1 %v1176_v43  ;;  %v829_v43 = vld [vmem:[#allocation2 + $0x7c0] sm:$0xff] }
 0x433   :  { %1179 = vmatprep.subr.bf16.mxu1 %v1178_v46  ;;  %v1198_v46 = vpack.c.bf16 %v832_v41, %v830_v40 }
 0x436   :  { %1181 = vmatpush1.bf16.msra.mxu1 %v1180_v52  ;;  %v836_v52 = vld [vmem:[#allocation2 + $0x7f8] sm:$0xff] }
 0x437   :  { %1183 = vmatprep.subr.bf16.mxu1 %v1182_v14 }
 0x43a   :  { %1185 = vmatpush1.bf16.msra.mxu1 %v1184_v17 }
 0x43b   :  { %1187 = vmatprep.subr.bf16.mxu1 %v1186_v22 }
 0x43e   :  { %1189 = vmatpush1.bf16.msra.mxu1 %v1188_v34 }
 0x43f   :  { %1191 = vmatprep.subr.bf16.mxu1 %v1190_v28 }
 0x442   :  { %1193 = vmatpush1.bf16.msra.mxu1 %v1192_v31 }
 0x443   :  { %1195 = vmatprep.subr.bf16.mxu1 %v1194_v36 }
 0x446   :  { %1197 = vmatpush1.bf16.msra.mxu1 %v1196_v39 }
 0x447   :  { %1199 = vmatprep.subr.bf16.mxu1 %v1198_v46 }
 0x4b9   :  { %v708_v53 = vpop.xlane.xlu1 %707  ;;  %v696_v54 = vpop.xlane.xlu0 %695 }
 0x4ba   :  { %v709_v56 = vmul.f32 0.03125, %v708_v53  ;;  %v697_v57 = vmul.f32 0.03125, %v696_v54  ;;  %v1200_v53 = vpack.c.bf16 %v831_v51, %v829_v43  ;;  %v1202_v54 = vpack.c.bf16 %v836_v52, %v834_v50 }
 0x4bc   :  { %v711_v58 = vsel %vm1325_vm6, %v709_v56, 0.0  ;;  %v699_v59 = vsel %vm46_vm4, %v697_v57, 0.0  ;;  %1201 = vmatpush1.bf16.msra.mxu1 %v1200_v53  ;;  %v833_v56 = vld [vmem:[#allocation2 + $0x7e0] sm:$0xff]  ;;  %v835_v57 = vld [vmem:[#allocation2 + $0x7f0] sm:$0xff] }
 0x4bd   :  { %v713_v60 = vadd.f32 %v711_v58, %v699_v59  ;;  %v684_v61 = vpop.xlane.xlu1 %683  ;;  %v672_v62 = vpop.xlane.xlu0 %671  ;;  %1203 = vmatprep.subr.bf16.mxu1 %v1202_v54  ;;  %v1204_v58 = vpack.c.bf16 %v835_v57, %v833_v56 }
 0x4be   :  { %v685_v63 = vmul.f32 0.015625, %v684_v61  ;;  %v673_v0 = vmul.f32 0.015625, %v672_v62 }
 0x4bf   :  { %v1424_v1 = vsub.f32 %v1401_v47, %v713_v60 }
 0x4c0   :  { %v686_v2 = vsel %vm37_vm5, %v685_v63, 0.0  ;;  %v674_v3 = vsel %vm33_vm0, %v673_v0, 0.0  ;;  %1205 = vmatpush1.bf16.msra.mxu1 %v1204_v58 }
 0x4c1   :  { %v688_v4 = vadd.f32 %v686_v2, %v674_v3  ;;  %v717_v19 = vmul.f32 %v1424_v1, %v1424_v1 }
 0x4c3   :  { %v755_v5 = vsel %vm1325_vm6, %v717_v19, 0.0  ;;  %v743_v6 = vsel %vm46_vm4, %v717_v19, 0.0  ;;  %v1437_v7 = vsub.f32 %v1399_v32, %v688_v4 }
 0x4c4   :  { %v757_v47 = vsel %vm220_vm3, %v755_v5, 0.0  ;;  %v745_v18 = vsel %vm220_vm3, %v743_v6, 0.0 }
 0x4c5   :  { %759 = vadd.xlane.f32.xlu1 %v757_v47  ;;  %747 = vadd.xlane.f32.xlu0 %v745_v18  ;;  %v716_v8 = vmul.f32 %v1437_v7, %v1437_v7 }
 0x4c7   :  { %v730_v9 = vsel %vm37_vm5, %v716_v8, 0.0  ;;  %v718_v10 = vsel %vm33_vm0, %v716_v8, 0.0 }
 0x4c8   :  { %v732_v11 = vsel %vm220_vm3, %v730_v9, 0.0  ;;  %v720_v32 = vsel %vm220_vm3, %v718_v10, 0.0 }
 0x4c9   :  { %735 = vadd.xlane.f32.xlu1 %v732_v11  ;;  %723 = vadd.xlane.f32.xlu0 %v720_v32  ;;  %v949_v32 = vld [vmem:[%s1472_s2 + $0x6] sm:$0x3] }
 0x4ca   :  { %v926_v12 = vrot.slane %v949_v32, %v1300_v45  ;;  %v930_v44 = vrot.slane %v949_v32, %v1306_v48 }
 0x4cc   :  { %v931_v14 = vcombine.low %v926_v12, %v930_v44 }
 0x552   :  { %v760_v59 = vpop.xlane.xlu1 %759  ;;  %v748_v60 = vpop.xlane.xlu0 %747 }
 0x553   :  { %v761_v61 = vmul.f32 0.03125, %v760_v59  ;;  %v749_v62 = vmul.f32 0.03125, %v748_v60 }
 0x555   :  { %v763_v63 = vsel %vm1325_vm6, %v761_v61, 0.0  ;;  %v751_v0 = vsel %vm46_vm4, %v749_v62, 0.0 }
 0x556   :  { %v765_v2 = vadd.f32 %v763_v63, %v751_v0  ;;  %v736_v3 = vpop.xlane.xlu1 %735  ;;  %v724_v4 = vpop.xlane.xlu0 %723 }
 0x557   :  { %v737_v19 = vmul.f32 0.015625, %v736_v3  ;;  %v725_v5 = vmul.f32 0.015625, %v724_v4 }
 0x558   :  { %v767_v6 = vadd.f32 1e-05, %v765_v2 }
 0x559   :  { %v738_v47 = vsel %vm37_vm5, %v737_v19, 0.0  ;;  %v726_v18 = vsel %vm33_vm0, %v725_v5, 0.0 }
 0x55a   :  { %1214 = vrsqrt.f32 %v767_v6  ;;  %v740_v8 = vadd.f32 %v738_v47, %v726_v18 }
 0x55c   :  { %v766_v9 = vadd.f32 1e-05, %v740_v8 }
 0x55e   :  { %1216 = vrsqrt.f32 %v766_v9 }
 0x564   :  { %v1215_v55 = vpop.eup %1214 }
 0x565   :  { %v771_v49 = vmul.f32 %v1215_v55, %v1424_v1  ;;  %v938_v1 = vrot.slane %v931_v14, %v1282_v42 }
 0x567   :  { %901 = vmatprep.mubr.f32.mxu1 %v771_v49 }
 0x568   :  { %v1217_v10 = vpop.eup %1216 }
 0x569   :  { %v770_v11 = vmul.f32 %v1217_v10, %v1437_v7 }
 0x56b   :  { %902 = vmatmul.mubr.f32.vlgmr.msra.gmra.mrb[2].mxu1 %v770_v11 }
 0x63e   :  { %v903_v13 = vpop.f32.mrb[2].mxu1 }
 0x63f   :  { %v905_v15 = vpop.f32.mrb[3].mxu1 }
 0x640   :  { %v910_v16 = vcombine.low %v903_v13, %v905_v15 }
 0x642   :  { %v917_v17 = vrot.slane %v910_v16, %v1282_v42 }
 0x644   :  { %v919_v20 = vadd.f32 %v917_v17, %v1390_v25 }
 0x646   :  { %v940_v7 = vadd.f32 %v938_v1, %v919_v20 }
 0x648   :  { %941 = vst [vmem:[%s1473_s3] sm:$0xf] %v940_v7 }
 0x649   :  { %946 = vsyncpa [#allocation3], 1 }

</bundles_post_ra>
